<compile_context>
chip_gen: v7x
topology: tpu7x:2x2x1
jax: 0.10.0
libtpu: 0.0.40
codegen_flags: <defaults>
</compile_context>

<pallas_src>
import functools

import jax
import jax.numpy as jnp
from jax.experimental import pallas as pl
from jax.experimental.pallas import tpu as pltpu


def _round_up(x, m):
    return ((x + m - 1) // m) * m


# ----------------------------------------------------------------------------
# Fused Pallas kernel (all LSTM layers + MLP head, single invocation)
# ----------------------------------------------------------------------------
def make_fused_kernel(layer_dim, hidden_dim, seq_len, batch_pad, d_pad, c1, unroll):
    H = hidden_dim
    T = seq_len
    Bp = batch_pad
    Dpad = d_pad
    R = Dpad + H + 1          # rows per packed LSTM layer: [W_ih | W_hh | bias]
    C1 = c1                   # lane offset of the fc2 section in the head pack

    def kernel(x_ref, h0_ref, c0_ref, lstm_ref, head_ref,
               y_ref, hn_ref, cn_ref, gx_scr, seq_scr):
        # layer_in is (T*Bp, Din_l), time-major rows (t major, padded-batch minor)
        layer_in = x_ref[...]

        for l in range(layer_dim):
            d_in = Dpad if l == 0 else H
            w_l = lstm_ref[l]                       # (R, 4H) packed layer weights
            wih = w_l[0:d_in, :]                    # (d_in, 4H)
            whh = w_l[Dpad:Dpad + H, :]             # (H, 4H)
            b = w_l[Dpad + H:R, :]                  # (1, 4H) = b_ih + b_hh

            # Hoisted input projection for ALL timesteps: one MXU matmul (M = T*Bp).
            gx_scr[...] = (jnp.dot(layer_in, wih, preferred_element_type=jnp.float32)
                           + b)

            def step(t, carry, whh=whh):
                h, c = carry
                row = pl.multiple_of(t * Bp, Bp)    # Bp == 8k -> sublane-aligned
                gates = (gx_scr[pl.ds(row, Bp), :]
                         + jnp.dot(h, whh, preferred_element_type=jnp.float32))
                # Two full-width EUP passes, then lane-slice (PyTorch order i,f,g,o).
                sig = jax.nn.sigmoid(gates)
                th = jnp.tanh(gates)
                i_g = sig[:, 0 * H:1 * H]
                f_g = sig[:, 1 * H:2 * H]
                g_g = th[:, 2 * H:3 * H]
                o_g = sig[:, 3 * H:4 * H]
                c_new = f_g * c + i_g * g_g
                h_new = o_g * jnp.tanh(c_new)
                seq_scr[pl.ds(row, Bp), :] = h_new  # aligned full-sublane store
                return (h_new, c_new)

            # TODO(synk): hold W_hh resident in the MXU across the recurrence
            # (pltpu.matmul_push_rhs / matmul_acc_lhs) to shave the serial path further.
            h_n, c_n = jax.lax.fori_loop(0, T, step, (h0_ref[l], c0_ref[l]),
                                         unroll=unroll)
            hn_ref[l] = h_n
            cn_ref[l] = c_n
            # Next layer (or MLP head) consumes the full sequence from VMEM scratch.
            layer_in = seq_scr[...]                 # (T*Bp, H)

        # fc1 -> ReLU -> dropout (identity in eval) -> fc2, on the whole sequence at once.
        # TODO(synk): training-mode dropout (in-kernel PRNG mask) not implemented.
        w1 = head_ref[0:H, 0:H]
        b1 = head_ref[H:H + 1, 0:H]
        w2 = head_ref[0:H, C1:]                     # (H, Opad), zero-padded cols
        b2 = head_ref[H:H + 1, C1:]
        h1 = jnp.dot(layer_in, w1, preferred_element_type=jnp.float32) + b1
        h1 = jnp.maximum(h1, 0.0)
        y = jnp.dot(h1, w2, preferred_element_type=jnp.float32) + b2
        y_ref[...] = y                              # lane-dense (Opad=128) unmasked store

    return kernel


# ----------------------------------------------------------------------------
# Wrapper
# ----------------------------------------------------------------------------
@functools.partial(jax.jit, static_argnames=("layer_dim",))
def lstm_model_forward(params, x, h0, c0, *, layer_dim):
    """Pallas implementation of LSTMModel.forward (eval mode).

    x: (B, T, input_dim) batch_first; h0/c0: (layer_dim, B, hidden_dim).
    Returns (y (B, T, output_dim), (h_n, c_n)).
    """
    B, T, Din = x.shape
    H = h0.shape[-1]
    O = params["w2"].shape[1]

    Bp = _round_up(max(B, 8), 8)            # pad batch to full sublanes
    Dpad = _round_up(max(Din, H), 8)        # common (padded) layer-0 input width
    Opad = _round_up(max(O, 128), 128)      # lane-dense output slab
    C1 = _round_up(max(H, 128), 128)        # lane offset of fc2 section in head pack
    R = Dpad + H + 1

    # ---- activations: time-major, batch/feature zero-padded, flattened to 2-D ----
    x_tm = jnp.transpose(x, (1, 0, 2))                               # (T, B, Din)
    x_tm = jnp.pad(x_tm, ((0, 0), (0, Bp - B), (0, Dpad - Din)))
    x2d = x_tm.reshape(T * Bp, Dpad)
    h0p = jnp.pad(h0, ((0, 0), (0, Bp - B), (0, 0)))
    c0p = jnp.pad(c0, ((0, 0), (0, Bp - B), (0, 0)))

    # ---- pack the 13 small weights into 2 arrays (2 input DMAs instead of 13) ----
    lstm_pack = jnp.zeros((layer_dim, R, 4 * H), jnp.float32)
    for l in range(layer_dim):
        w_ih = params[f"w_ih_{l}"]                                   # (d_in, 4H)
        lstm_pack = lstm_pack.at[l, :w_ih.shape[0], :].set(w_ih)
        lstm_pack = lstm_pack.at[l, Dpad:Dpad + H, :].set(params[f"w_hh_{l}"])
        lstm_pack = lstm_pack.at[l, Dpad + H, :].set(params[f"b_{l}"][0])

    head_pack = jnp.zeros((H + 1, C1 + Opad), jnp.float32)
    head_pack = head_pack.at[:H, :H].set(params["w1"])
    head_pack = head_pack.at[H, :H].set(params["b1"][0])
    head_pack = head_pack.at[:H, C1:C1 + O].set(params["w2"])
    head_pack = head_pack.at[H, C1:C1 + O].set(params["b2"][0])

    # ---- VMEM budget / cost hint ----
    f32 = 4
    vmem_bytes = f32 * (
        2 * T * Bp * Dpad                              # x (double-buffered)
        + 2 * 2 * layer_dim * Bp * H                   # h0, c0
        + 2 * layer_dim * R * 4 * H                    # packed LSTM weights
        + 2 * (H + 1) * (C1 + Opad)                    # packed head weights
        + 2 * (T * Bp * Opad + 2 * layer_dim * Bp * H) # outputs
        + T * Bp * 4 * H + T * Bp * H                  # scratches
    )
    vmem_limit = int(min(max(2 * vmem_bytes, 16 * 1024 * 1024), 100 * 1024 * 1024))

    flops = 0
    for l in range(layer_dim):
        d_in = Dpad if l == 0 else H
        flops += 2 * T * Bp * d_in * 4 * H             # hoisted X @ W_ih
        flops += 2 * T * Bp * H * 4 * H                # serial h @ W_hh
    flops += 2 * T * Bp * H * H + 2 * T * Bp * H * Opad
    transcendentals = layer_dim * T * (2 * Bp * 4 * H + Bp * H)
    bytes_accessed = f32 * (T * Bp * Dpad + 4 * layer_dim * Bp * H
                            + layer_dim * R * 4 * H + (H + 1) * (C1 + Opad)
                            + T * Bp * Opad)

    kernel = make_fused_kernel(layer_dim, H, T, Bp, Dpad, C1, unroll=min(T, 8))

    y2d, h_n, c_n = pl.pallas_call(
        kernel,
        out_shape=(
            jax.ShapeDtypeStruct((T * Bp, Opad), jnp.float32),        # y (lane-dense slab)
            jax.ShapeDtypeStruct((layer_dim, Bp, H), jnp.float32),    # h_n
            jax.ShapeDtypeStruct((layer_dim, Bp, H), jnp.float32),    # c_n
        ),
        grid=(1,),
        in_specs=[
            pl.BlockSpec((T * Bp, Dpad), lambda i: (0, 0)),           # x (time-major, flat)
            pl.BlockSpec((layer_dim, Bp, H), lambda i: (0, 0, 0)),    # h0
            pl.BlockSpec((layer_dim, Bp, H), lambda i: (0, 0, 0)),    # c0
            pl.BlockSpec((layer_dim, R, 4 * H), lambda i: (0, 0, 0)), # packed LSTM weights
            pl.BlockSpec((H + 1, C1 + Opad), lambda i: (0, 0)),       # packed head weights
        ],
        out_specs=(
            pl.BlockSpec((T * Bp, Opad), lambda i: (0, 0)),
            pl.BlockSpec((layer_dim, Bp, H), lambda i: (0, 0, 0)),
            pl.BlockSpec((layer_dim, Bp, H), lambda i: (0, 0, 0)),
        ),
        scratch_shapes=[
            pltpu.VMEM((T * Bp, 4 * H), jnp.float32),   # hoisted input-gate projections
            pltpu.VMEM((T * Bp, H), jnp.float32),       # per-layer sequence output
        ],
        compiler_params=pltpu.CompilerParams(
            dimension_semantics=("arbitrary",),
            vmem_limit_bytes=vmem_limit,
        ),
        cost_estimate=pl.CostEstimate(flops=flops,
                                      transcendentals=transcendentals,
                                      bytes_accessed=bytes_accessed),
    )(x2d, h0p, c0p, lstm_pack, head_pack)

    # Slice padding away and return batch_first layout.
    y = y2d.reshape(T, Bp, Opad)[:, :B, :O].transpose(1, 0, 2)        # (B, T, O)
    return y, (h_n[:, :B, :], c_n[:, :B, :])


# ----------------------------------------------------------------------------
# Pure-JAX reference (same math) for a sanity check
# ----------------------------------------------------------------------------
def ref_forward(params, x, h0, c0, *, layer_dim, hidden_dim):
    H = hidden_dim
    inp = x
    hs, cs = [], []
    for l in range(layer_dim):
        w_ih, w_hh, b = params[f"w_ih_{l}"], params[f"w_hh_{l}"], params[f"b_{l}"]

        def step(carry, x_t, w_ih=w_ih, w_hh=w_hh, b=b):
            h, c = carry
            g = x_t @ w_ih + h @ w_hh + b
            i = jax.nn.sigmoid(g[:, :H])
            f = jax.nn.sigmoid(g[:, H:2 * H])
            gg = jnp.tanh(g[:, 2 * H:3 * H])
            o = jax.nn.sigmoid(g[:, 3 * H:])
            c = f * c + i * gg
            h = o * jnp.tanh(c)
            return (h, c), h

        (hn, cn), outs = jax.lax.scan(step, (h0[l], c0[l]), jnp.transpose(inp, (1, 0, 2)))
        inp = jnp.transpose(outs, (1, 0, 2))
        hs.append(hn)
        cs.append(cn)
    h = jnp.maximum(inp @ params["w1"] + params["b1"], 0.0)
    y = h @ params["w2"] + params["b2"]
    return y, (jnp.stack(hs), jnp.stack(cs))


# ----------------------------------------------------------------------------
# Main
# ----------------------------------------------------------------------------
if __name__ == "__main__":
    input_dim, output_dim, hidden_dim, layer_dim = 8, 4, 32, 2
    B, T = 2, 8
    H = hidden_dim

    key = jax.random.PRNGKey(0)
    k = 1.0 / jnp.sqrt(hidden_dim)

    params = {}
    for l in range(layer_dim):
        d_in = input_dim if l == 0 else hidden_dim
        key, k1, k2, k3, k4 = jax.random.split(key, 5)
        # stored already transposed relative to PyTorch: (d_in, 4H) / (H, 4H); gate order i,f,g,o
        params[f"w_ih_{l}"] = jax.random.uniform(k1, (d_in, 4 * H), jnp.float32, -k, k)
        params[f"w_hh_{l}"] = jax.random.uniform(k2, (H, 4 * H), jnp.float32, -k, k)
        b_ih = jax.random.uniform(k3, (1, 4 * H), jnp.float32, -k, k)
        b_hh = jax.random.uniform(k4, (1, 4 * H), jnp.float32, -k, k)
        params[f"b_{l}"] = b_ih + b_hh

    key, k1, k2, k3, k4 = jax.random.split(key, 5)
    params["w1"] = jax.random.uniform(k1, (H, H), jnp.float32, -k, k)
    params["b1"] = jax.random.uniform(k2, (1, H), jnp.float32, -k, k)
    params["w2"] = jax.random.uniform(k3, (H, output_dim), jnp.float32, -k, k)
    params["b2"] = jax.random.uniform(k4, (1, output_dim), jnp.float32, -k, k)

    key, kx, kh, kc = jax.random.split(key, 4)
    x = jax.random.normal(kx, (B, T, input_dim), jnp.float32)
    h0 = jax.random.normal(kh, (layer_dim, B, H), jnp.float32)
    c0 = jax.random.normal(kc, (layer_dim, B, H), jnp.float32)

    (y, (h_n, c_n)) = lstm_model_forward(params, x, h0, c0, layer_dim=layer_dim)
    jax.block_until_ready((y, h_n, c_n))

    y_ref, (h_ref, c_ref) = ref_forward(params, x, h0, c0,
                                        layer_dim=layer_dim, hidden_dim=hidden_dim)
    assert y.shape == (B, T, output_dim)
    assert h_n.shape == (layer_dim, B, H) and c_n.shape == (layer_dim, B, H)
    assert jnp.allclose(y, y_ref, rtol=1e-4, atol=1e-4)
    assert jnp.allclose(h_n, h_ref, rtol=1e-4, atol=1e-4)
    assert jnp.allclose(c_n, c_ref, rtol=1e-4, atol=1e-4)

    print("KERNEL_OK")
</pallas_src>

<mosaic_0001>
module attributes {stable_mosaic.version = 11 : i64} {
  func.func @kernel(%arg0: i32, %arg1: memref<64x32xf32, #tpu.memory_space<vmem>>, %arg2: memref<2x8x32xf32, #tpu.memory_space<vmem>>, %arg3: memref<2x8x32xf32, #tpu.memory_space<vmem>>, %arg4: memref<2x65x128xf32, #tpu.memory_space<vmem>>, %arg5: memref<33x256xf32, #tpu.memory_space<vmem>>, %arg6: memref<64x128xf32, #tpu.memory_space<vmem>>, %arg7: memref<2x8x32xf32, #tpu.memory_space<vmem>>, %arg8: memref<2x8x32xf32, #tpu.memory_space<vmem>>, %arg9: memref<64x128xf32, #tpu.memory_space<vmem>>, %arg10: memref<64x32xf32, #tpu.memory_space<vmem>>) attributes {dimension_semantics = [#tpu.dimension_semantics<arbitrary>], iteration_bounds = array<i64: 1>, scalar_prefetch = 0 : i64, scratch_operands = 2 : i64, tpu.core_type = #tpu.core_type<tc>, window_params = [{pipeline_mode = #tpu.pipeline_mode<synchronous>, transform_indices = @transform_0, window_bounds = array<i64: 64, 32>}, {pipeline_mode = #tpu.pipeline_mode<synchronous>, transform_indices = @transform_1, window_bounds = array<i64: 2, 8, 32>}, {pipeline_mode = #tpu.pipeline_mode<synchronous>, transform_indices = @transform_2, window_bounds = array<i64: 2, 8, 32>}, {pipeline_mode = #tpu.pipeline_mode<synchronous>, transform_indices = @transform_3, window_bounds = array<i64: 2, 65, 128>}, {pipeline_mode = #tpu.pipeline_mode<synchronous>, transform_indices = @transform_4, window_bounds = array<i64: 33, 256>}, {pipeline_mode = #tpu.pipeline_mode<synchronous>, transform_indices = @transform_5, window_bounds = array<i64: 64, 128>}, {pipeline_mode = #tpu.pipeline_mode<synchronous>, transform_indices = @transform_6, window_bounds = array<i64: 2, 8, 32>}, {pipeline_mode = #tpu.pipeline_mode<synchronous>, transform_indices = @transform_7, window_bounds = array<i64: 2, 8, 32>}]} {
    %c0 = arith.constant 0 : index
    %c0_0 = arith.constant 0 : index
    %0 = vector.load %arg1[%c0, %c0_0] : memref<64x32xf32, #tpu.memory_space<vmem>>, vector<64x32xf32>
    %c0_1 = arith.constant 0 : index
    %c0_2 = arith.constant 0 : index
    %c0_3 = arith.constant 0 : index
    %1 = vector.load %arg4[%c0_1, %c0_2, %c0_3] : memref<2x65x128xf32, #tpu.memory_space<vmem>>, vector<1x65x128xf32>
    %2 = vector.shape_cast %1 : vector<1x65x128xf32> to vector<65x128xf32>
    %3 = vector.extract_strided_slice %2 {offsets = [0, 0], sizes = [32, 128], strides = [1, 1]} : vector<65x128xf32> to vector<32x128xf32>
    %4 = vector.extract_strided_slice %2 {offsets = [32, 0], sizes = [32, 128], strides = [1, 1]} : vector<65x128xf32> to vector<32x128xf32>
    %5 = vector.extract_strided_slice %2 {offsets = [64, 0], sizes = [1, 128], strides = [1, 1]} : vector<65x128xf32> to vector<1x128xf32>
    %cst = arith.constant dense<0.000000e+00> : vector<64x128xf32>
    %6 = tpu.matmul %0, %3, %cst {dimension_numbers = #tpu.dot_dimension_numbers<[1], [0], [0], [1], [0, 0, 1, 1], [], []>} : vector<64x32xf32>, vector<32x128xf32>, vector<64x128xf32> -> vector<64x128xf32>
    %7 = vector.broadcast %5 : vector<1x128xf32> to vector<64x128xf32>
    %8 = arith.addf %6, %7 : vector<64x128xf32>
    %c0_4 = arith.constant 0 : index
    %c0_5 = arith.constant 0 : index
    %9 = vector.load %arg9[%c0_4, %c0_5] : memref<64x128xf32, #tpu.memory_space<vmem>>, vector<64x128xf32>
    tpu.vector_store %arg9[%c0_4, %c0_5], %8 {strides = array<i32>} : memref<64x128xf32, #tpu.memory_space<vmem>>, vector<64x128xf32>,
    %c0_6 = arith.constant 0 : index
    %c0_7 = arith.constant 0 : index
    %c0_8 = arith.constant 0 : index
    %10 = vector.load %arg2[%c0_6, %c0_7, %c0_8] : memref<2x8x32xf32, #tpu.memory_space<vmem>>, vector<1x8x32xf32>
    %11 = vector.shape_cast %10 : vector<1x8x32xf32> to vector<8x32xf32>
    %c0_9 = arith.constant 0 : index
    %c0_10 = arith.constant 0 : index
    %c0_11 = arith.constant 0 : index
    %12 = vector.load %arg3[%c0_9, %c0_10, %c0_11] : memref<2x8x32xf32, #tpu.memory_space<vmem>>, vector<1x8x32xf32>
    %13 = vector.shape_cast %12 : vector<1x8x32xf32> to vector<8x32xf32>
    %c0_i32 = arith.constant 0 : i32
    %c8_i32 = arith.constant 8 : i32
    %14 = arith.muli %c0_i32, %c8_i32 : i32
    %15 = tpu.assume_multiple %14, 8 : i32
    %16 = arith.index_cast %15 : i32 to index
    %c0_12 = arith.constant 0 : index
    %17 = vector.load %arg9[%16, %c0_12] : memref<64x128xf32, #tpu.memory_space<vmem>>, vector<8x128xf32>
    %cst_13 = arith.constant dense<0.000000e+00> : vector<8x128xf32>
    %18 = tpu.matmul %11, %4, %cst_13 {dimension_numbers = #tpu.dot_dimension_numbers<[1], [0], [0], [1], [0, 0, 1, 1], [], []>} : vector<8x32xf32>, vector<32x128xf32>, vector<8x128xf32> -> vector<8x128xf32>
    %19 = arith.addf %17, %18 : vector<8x128xf32>
    %20 = arith.negf %19 : vector<8x128xf32>
    %21 = math.exp %20 : vector<8x128xf32>
    %cst_14 = arith.constant 1.000000e+00 : f32
    %22 = vector.broadcast %cst_14 : f32 to vector<8x128xf32>
    %23 = arith.addf %22, %21 : vector<8x128xf32>
    %24 = arith.divf %22, %23 : vector<8x128xf32>
    %25 = math.tanh %19 : vector<8x128xf32>
    %26 = vector.extract_strided_slice %24 {offsets = [0, 0], sizes = [8, 32], strides = [1, 1]} : vector<8x128xf32> to vector<8x32xf32>
    %27 = vector.extract_strided_slice %24 {offsets = [0, 32], sizes = [8, 32], strides = [1, 1]} : vector<8x128xf32> to vector<8x32xf32>
    %28 = vector.extract_strided_slice %25 {offsets = [0, 64], sizes = [8, 32], strides = [1, 1]} : vector<8x128xf32> to vector<8x32xf32>
    %29 = vector.extract_strided_slice %24 {offsets = [0, 96], sizes = [8, 32], strides = [1, 1]} : vector<8x128xf32> to vector<8x32xf32>
    %30 = arith.mulf %27, %13 : vector<8x32xf32>
    %31 = arith.mulf %26, %28 : vector<8x32xf32>
    %32 = arith.addf %30, %31 : vector<8x32xf32>
    %33 = math.tanh %32 : vector<8x32xf32>
    %34 = arith.mulf %29, %33 : vector<8x32xf32>
    %35 = arith.index_cast %15 : i32 to index
    %c0_15 = arith.constant 0 : index
    %36 = vector.load %arg10[%35, %c0_15] : memref<64x32xf32, #tpu.memory_space<vmem>>, vector<8x32xf32>
    tpu.vector_store %arg10[%35, %c0_15], %34 {strides = array<i32>} : memref<64x32xf32, #tpu.memory_space<vmem>>, vector<8x32xf32>,
    %c1_i32 = arith.constant 1 : i32
    %c8_i32_16 = arith.constant 8 : i32
    %37 = arith.muli %c1_i32, %c8_i32_16 : i32
    %38 = tpu.assume_multiple %37, 8 : i32
    %39 = arith.index_cast %38 : i32 to index
    %c0_17 = arith.constant 0 : index
    %40 = vector.load %arg9[%39, %c0_17] : memref<64x128xf32, #tpu.memory_space<vmem>>, vector<8x128xf32>
    %cst_18 = arith.constant dense<0.000000e+00> : vector<8x128xf32>
    %41 = tpu.matmul %34, %4, %cst_18 {dimension_numbers = #tpu.dot_dimension_numbers<[1], [0], [0], [1], [0, 0, 1, 1], [], []>} : vector<8x32xf32>, vector<32x128xf32>, vector<8x128xf32> -> vector<8x128xf32>
    %42 = arith.addf %40, %41 : vector<8x128xf32>
    %43 = arith.negf %42 : vector<8x128xf32>
    %44 = math.exp %43 : vector<8x128xf32>
    %cst_19 = arith.constant 1.000000e+00 : f32
    %45 = vector.broadcast %cst_19 : f32 to vector<8x128xf32>
    %46 = arith.addf %45, %44 : vector<8x128xf32>
    %47 = arith.divf %45, %46 : vector<8x128xf32>
    %48 = math.tanh %42 : vector<8x128xf32>
    %49 = vector.extract_strided_slice %47 {offsets = [0, 0], sizes = [8, 32], strides = [1, 1]} : vector<8x128xf32> to vector<8x32xf32>
    %50 = vector.extract_strided_slice %47 {offsets = [0, 32], sizes = [8, 32], strides = [1, 1]} : vector<8x128xf32> to vector<8x32xf32>
    %51 = vector.extract_strided_slice %48 {offsets = [0, 64], sizes = [8, 32], strides = [1, 1]} : vector<8x128xf32> to vector<8x32xf32>
    %52 = vector.extract_strided_slice %47 {offsets = [0, 96], sizes = [8, 32], strides = [1, 1]} : vector<8x128xf32> to vector<8x32xf32>
    %53 = arith.mulf %50, %32 : vector<8x32xf32>
    %54 = arith.mulf %49, %51 : vector<8x32xf32>
    %55 = arith.addf %53, %54 : vector<8x32xf32>
    %56 = math.tanh %55 : vector<8x32xf32>
    %57 = arith.mulf %52, %56 : vector<8x32xf32>
    %58 = arith.index_cast %38 : i32 to index
    %c0_20 = arith.constant 0 : index
    %59 = vector.load %arg10[%58, %c0_20] : memref<64x32xf32, #tpu.memory_space<vmem>>, vector<8x32xf32>
    tpu.vector_store %arg10[%58, %c0_20], %57 {strides = array<i32>} : memref<64x32xf32, #tpu.memory_space<vmem>>, vector<8x32xf32>,
    %c2_i32 = arith.constant 2 : i32
    %c8_i32_21 = arith.constant 8 : i32
    %60 = arith.muli %c2_i32, %c8_i32_21 : i32
    %61 = tpu.assume_multiple %60, 8 : i32
    %62 = arith.index_cast %61 : i32 to index
    %c0_22 = arith.constant 0 : index
    %63 = vector.load %arg9[%62, %c0_22] : memref<64x128xf32, #tpu.memory_space<vmem>>, vector<8x128xf32>
    %cst_23 = arith.constant dense<0.000000e+00> : vector<8x128xf32>
    %64 = tpu.matmul %57, %4, %cst_23 {dimension_numbers = #tpu.dot_dimension_numbers<[1], [0], [0], [1], [0, 0, 1, 1], [], []>} : vector<8x32xf32>, vector<32x128xf32>, vector<8x128xf32> -> vector<8x128xf32>
    %65 = arith.addf %63, %64 : vector<8x128xf32>
    %66 = arith.negf %65 : vector<8x128xf32>
    %67 = math.exp %66 : vector<8x128xf32>
    %cst_24 = arith.constant 1.000000e+00 : f32
    %68 = vector.broadcast %cst_24 : f32 to vector<8x128xf32>
    %69 = arith.addf %68, %67 : vector<8x128xf32>
    %70 = arith.divf %68, %69 : vector<8x128xf32>
    %71 = math.tanh %65 : vector<8x128xf32>
    %72 = vector.extract_strided_slice %70 {offsets = [0, 0], sizes = [8, 32], strides = [1, 1]} : vector<8x128xf32> to vector<8x32xf32>
    %73 = vector.extract_strided_slice %70 {offsets = [0, 32], sizes = [8, 32], strides = [1, 1]} : vector<8x128xf32> to vector<8x32xf32>
    %74 = vector.extract_strided_slice %71 {offsets = [0, 64], sizes = [8, 32], strides = [1, 1]} : vector<8x128xf32> to vector<8x32xf32>
    %75 = vector.extract_strided_slice %70 {offsets = [0, 96], sizes = [8, 32], strides = [1, 1]} : vector<8x128xf32> to vector<8x32xf32>
    %76 = arith.mulf %73, %55 : vector<8x32xf32>
    %77 = arith.mulf %72, %74 : vector<8x32xf32>
    %78 = arith.addf %76, %77 : vector<8x32xf32>
    %79 = math.tanh %78 : vector<8x32xf32>
    %80 = arith.mulf %75, %79 : vector<8x32xf32>
    %81 = arith.index_cast %61 : i32 to index
    %c0_25 = arith.constant 0 : index
    %82 = vector.load %arg10[%81, %c0_25] : memref<64x32xf32, #tpu.memory_space<vmem>>, vector<8x32xf32>
    tpu.vector_store %arg10[%81, %c0_25], %80 {strides = array<i32>} : memref<64x32xf32, #tpu.memory_space<vmem>>, vector<8x32xf32>,
    %c3_i32 = arith.constant 3 : i32
    %c8_i32_26 = arith.constant 8 : i32
    %83 = arith.muli %c3_i32, %c8_i32_26 : i32
    %84 = tpu.assume_multiple %83, 8 : i32
    %85 = arith.index_cast %84 : i32 to index
    %c0_27 = arith.constant 0 : index
    %86 = vector.load %arg9[%85, %c0_27] : memref<64x128xf32, #tpu.memory_space<vmem>>, vector<8x128xf32>
    %cst_28 = arith.constant dense<0.000000e+00> : vector<8x128xf32>
    %87 = tpu.matmul %80, %4, %cst_28 {dimension_numbers = #tpu.dot_dimension_numbers<[1], [0], [0], [1], [0, 0, 1, 1], [], []>} : vector<8x32xf32>, vector<32x128xf32>, vector<8x128xf32> -> vector<8x128xf32>
    %88 = arith.addf %86, %87 : vector<8x128xf32>
    %89 = arith.negf %88 : vector<8x128xf32>
    %90 = math.exp %89 : vector<8x128xf32>
    %cst_29 = arith.constant 1.000000e+00 : f32
    %91 = vector.broadcast %cst_29 : f32 to vector<8x128xf32>
    %92 = arith.addf %91, %90 : vector<8x128xf32>
    %93 = arith.divf %91, %92 : vector<8x128xf32>
    %94 = math.tanh %88 : vector<8x128xf32>
    %95 = vector.extract_strided_slice %93 {offsets = [0, 0], sizes = [8, 32], strides = [1, 1]} : vector<8x128xf32> to vector<8x32xf32>
    %96 = vector.extract_strided_slice %93 {offsets = [0, 32], sizes = [8, 32], strides = [1, 1]} : vector<8x128xf32> to vector<8x32xf32>
    %97 = vector.extract_strided_slice %94 {offsets = [0, 64], sizes = [8, 32], strides = [1, 1]} : vector<8x128xf32> to vector<8x32xf32>
    %98 = vector.extract_strided_slice %93 {offsets = [0, 96], sizes = [8, 32], strides = [1, 1]} : vector<8x128xf32> to vector<8x32xf32>
    %99 = arith.mulf %96, %78 : vector<8x32xf32>
    %100 = arith.mulf %95, %97 : vector<8x32xf32>
    %101 = arith.addf %99, %100 : vector<8x32xf32>
    %102 = math.tanh %101 : vector<8x32xf32>
    %103 = arith.mulf %98, %102 : vector<8x32xf32>
    %104 = arith.index_cast %84 : i32 to index
    %c0_30 = arith.constant 0 : index
    %105 = vector.load %arg10[%104, %c0_30] : memref<64x32xf32, #tpu.memory_space<vmem>>, vector<8x32xf32>
    tpu.vector_store %arg10[%104, %c0_30], %103 {strides = array<i32>} : memref<64x32xf32, #tpu.memory_space<vmem>>, vector<8x32xf32>,
    %c4_i32 = arith.constant 4 : i32
    %c8_i32_31 = arith.constant 8 : i32
    %106 = arith.muli %c4_i32, %c8_i32_31 : i32
    %107 = tpu.assume_multiple %106, 8 : i32
    %108 = arith.index_cast %107 : i32 to index
    %c0_32 = arith.constant 0 : index
    %109 = vector.load %arg9[%108, %c0_32] : memref<64x128xf32, #tpu.memory_space<vmem>>, vector<8x128xf32>
    %cst_33 = arith.constant dense<0.000000e+00> : vector<8x128xf32>
    %110 = tpu.matmul %103, %4, %cst_33 {dimension_numbers = #tpu.dot_dimension_numbers<[1], [0], [0], [1], [0, 0, 1, 1], [], []>} : vector<8x32xf32>, vector<32x128xf32>, vector<8x128xf32> -> vector<8x128xf32>
    %111 = arith.addf %109, %110 : vector<8x128xf32>
    %112 = arith.negf %111 : vector<8x128xf32>
    %113 = math.exp %112 : vector<8x128xf32>
    %cst_34 = arith.constant 1.000000e+00 : f32
    %114 = vector.broadcast %cst_34 : f32 to vector<8x128xf32>
    %115 = arith.addf %114, %113 : vector<8x128xf32>
    %116 = arith.divf %114, %115 : vector<8x128xf32>
    %117 = math.tanh %111 : vector<8x128xf32>
    %118 = vector.extract_strided_slice %116 {offsets = [0, 0], sizes = [8, 32], strides = [1, 1]} : vector<8x128xf32> to vector<8x32xf32>
    %119 = vector.extract_strided_slice %116 {offsets = [0, 32], sizes = [8, 32], strides = [1, 1]} : vector<8x128xf32> to vector<8x32xf32>
    %120 = vector.extract_strided_slice %117 {offsets = [0, 64], sizes = [8, 32], strides = [1, 1]} : vector<8x128xf32> to vector<8x32xf32>
    %121 = vector.extract_strided_slice %116 {offsets = [0, 96], sizes = [8, 32], strides = [1, 1]} : vector<8x128xf32> to vector<8x32xf32>
    %122 = arith.mulf %119, %101 : vector<8x32xf32>
    %123 = arith.mulf %118, %120 : vector<8x32xf32>
    %124 = arith.addf %122, %123 : vector<8x32xf32>
    %125 = math.tanh %124 : vector<8x32xf32>
    %126 = arith.mulf %121, %125 : vector<8x32xf32>
    %127 = arith.index_cast %107 : i32 to index
    %c0_35 = arith.constant 0 : index
    %128 = vector.load %arg10[%127, %c0_35] : memref<64x32xf32, #tpu.memory_space<vmem>>, vector<8x32xf32>
    tpu.vector_store %arg10[%127, %c0_35], %126 {strides = array<i32>} : memref<64x32xf32, #tpu.memory_space<vmem>>, vector<8x32xf32>,
    %c5_i32 = arith.constant 5 : i32
    %c8_i32_36 = arith.constant 8 : i32
    %129 = arith.muli %c5_i32, %c8_i32_36 : i32
    %130 = tpu.assume_multiple %129, 8 : i32
    %131 = arith.index_cast %130 : i32 to index
    %c0_37 = arith.constant 0 : index
    %132 = vector.load %arg9[%131, %c0_37] : memref<64x128xf32, #tpu.memory_space<vmem>>, vector<8x128xf32>
    %cst_38 = arith.constant dense<0.000000e+00> : vector<8x128xf32>
    %133 = tpu.matmul %126, %4, %cst_38 {dimension_numbers = #tpu.dot_dimension_numbers<[1], [0], [0], [1], [0, 0, 1, 1], [], []>} : vector<8x32xf32>, vector<32x128xf32>, vector<8x128xf32> -> vector<8x128xf32>
    %134 = arith.addf %132, %133 : vector<8x128xf32>
    %135 = arith.negf %134 : vector<8x128xf32>
    %136 = math.exp %135 : vector<8x128xf32>
    %cst_39 = arith.constant 1.000000e+00 : f32
    %137 = vector.broadcast %cst_39 : f32 to vector<8x128xf32>
    %138 = arith.addf %137, %136 : vector<8x128xf32>
    %139 = arith.divf %137, %138 : vector<8x128xf32>
    %140 = math.tanh %134 : vector<8x128xf32>
    %141 = vector.extract_strided_slice %139 {offsets = [0, 0], sizes = [8, 32], strides = [1, 1]} : vector<8x128xf32> to vector<8x32xf32>
    %142 = vector.extract_strided_slice %139 {offsets = [0, 32], sizes = [8, 32], strides = [1, 1]} : vector<8x128xf32> to vector<8x32xf32>
    %143 = vector.extract_strided_slice %140 {offsets = [0, 64], sizes = [8, 32], strides = [1, 1]} : vector<8x128xf32> to vector<8x32xf32>
    %144 = vector.extract_strided_slice %139 {offsets = [0, 96], sizes = [8, 32], strides = [1, 1]} : vector<8x128xf32> to vector<8x32xf32>
    %145 = arith.mulf %142, %124 : vector<8x32xf32>
    %146 = arith.mulf %141, %143 : vector<8x32xf32>
    %147 = arith.addf %145, %146 : vector<8x32xf32>
    %148 = math.tanh %147 : vector<8x32xf32>
    %149 = arith.mulf %144, %148 : vector<8x32xf32>
    %150 = arith.index_cast %130 : i32 to index
    %c0_40 = arith.constant 0 : index
    %151 = vector.load %arg10[%150, %c0_40] : memref<64x32xf32, #tpu.memory_space<vmem>>, vector<8x32xf32>
    tpu.vector_store %arg10[%150, %c0_40], %149 {strides = array<i32>} : memref<64x32xf32, #tpu.memory_space<vmem>>, vector<8x32xf32>,
    %c6_i32 = arith.constant 6 : i32
    %c8_i32_41 = arith.constant 8 : i32
    %152 = arith.muli %c6_i32, %c8_i32_41 : i32
    %153 = tpu.assume_multiple %152, 8 : i32
    %154 = arith.index_cast %153 : i32 to index
    %c0_42 = arith.constant 0 : index
    %155 = vector.load %arg9[%154, %c0_42] : memref<64x128xf32, #tpu.memory_space<vmem>>, vector<8x128xf32>
    %cst_43 = arith.constant dense<0.000000e+00> : vector<8x128xf32>
    %156 = tpu.matmul %149, %4, %cst_43 {dimension_numbers = #tpu.dot_dimension_numbers<[1], [0], [0], [1], [0, 0, 1, 1], [], []>} : vector<8x32xf32>, vector<32x128xf32>, vector<8x128xf32> -> vector<8x128xf32>
    %157 = arith.addf %155, %156 : vector<8x128xf32>
    %158 = arith.negf %157 : vector<8x128xf32>
    %159 = math.exp %158 : vector<8x128xf32>
    %cst_44 = arith.constant 1.000000e+00 : f32
    %160 = vector.broadcast %cst_44 : f32 to vector<8x128xf32>
    %161 = arith.addf %160, %159 : vector<8x128xf32>
    %162 = arith.divf %160, %161 : vector<8x128xf32>
    %163 = math.tanh %157 : vector<8x128xf32>
    %164 = vector.extract_strided_slice %162 {offsets = [0, 0], sizes = [8, 32], strides = [1, 1]} : vector<8x128xf32> to vector<8x32xf32>
    %165 = vector.extract_strided_slice %162 {offsets = [0, 32], sizes = [8, 32], strides = [1, 1]} : vector<8x128xf32> to vector<8x32xf32>
    %166 = vector.extract_strided_slice %163 {offsets = [0, 64], sizes = [8, 32], strides = [1, 1]} : vector<8x128xf32> to vector<8x32xf32>
    %167 = vector.extract_strided_slice %162 {offsets = [0, 96], sizes = [8, 32], strides = [1, 1]} : vector<8x128xf32> to vector<8x32xf32>
    %168 = arith.mulf %165, %147 : vector<8x32xf32>
    %169 = arith.mulf %164, %166 : vector<8x32xf32>
    %170 = arith.addf %168, %169 : vector<8x32xf32>
    %171 = math.tanh %170 : vector<8x32xf32>
    %172 = arith.mulf %167, %171 : vector<8x32xf32>
    %173 = arith.index_cast %153 : i32 to index
    %c0_45 = arith.constant 0 : index
    %174 = vector.load %arg10[%173, %c0_45] : memref<64x32xf32, #tpu.memory_space<vmem>>, vector<8x32xf32>
    tpu.vector_store %arg10[%173, %c0_45], %172 {strides = array<i32>} : memref<64x32xf32, #tpu.memory_space<vmem>>, vector<8x32xf32>,
    %c7_i32 = arith.constant 7 : i32
    %c8_i32_46 = arith.constant 8 : i32
    %175 = arith.muli %c7_i32, %c8_i32_46 : i32
    %176 = tpu.assume_multiple %175, 8 : i32
    %177 = arith.index_cast %176 : i32 to index
    %c0_47 = arith.constant 0 : index
    %178 = vector.load %arg9[%177, %c0_47] : memref<64x128xf32, #tpu.memory_space<vmem>>, vector<8x128xf32>
    %cst_48 = arith.constant dense<0.000000e+00> : vector<8x128xf32>
    %179 = tpu.matmul %172, %4, %cst_48 {dimension_numbers = #tpu.dot_dimension_numbers<[1], [0], [0], [1], [0, 0, 1, 1], [], []>} : vector<8x32xf32>, vector<32x128xf32>, vector<8x128xf32> -> vector<8x128xf32>
    %180 = arith.addf %178, %179 : vector<8x128xf32>
    %181 = arith.negf %180 : vector<8x128xf32>
    %182 = math.exp %181 : vector<8x128xf32>
    %cst_49 = arith.constant 1.000000e+00 : f32
    %183 = vector.broadcast %cst_49 : f32 to vector<8x128xf32>
    %184 = arith.addf %183, %182 : vector<8x128xf32>
    %185 = arith.divf %183, %184 : vector<8x128xf32>
    %186 = math.tanh %180 : vector<8x128xf32>
    %187 = vector.extract_strided_slice %185 {offsets = [0, 0], sizes = [8, 32], strides = [1, 1]} : vector<8x128xf32> to vector<8x32xf32>
    %188 = vector.extract_strided_slice %185 {offsets = [0, 32], sizes = [8, 32], strides = [1, 1]} : vector<8x128xf32> to vector<8x32xf32>
    %189 = vector.extract_strided_slice %186 {offsets = [0, 64], sizes = [8, 32], strides = [1, 1]} : vector<8x128xf32> to vector<8x32xf32>
    %190 = vector.extract_strided_slice %185 {offsets = [0, 96], sizes = [8, 32], strides = [1, 1]} : vector<8x128xf32> to vector<8x32xf32>
    %191 = arith.mulf %188, %170 : vector<8x32xf32>
    %192 = arith.mulf %187, %189 : vector<8x32xf32>
    %193 = arith.addf %191, %192 : vector<8x32xf32>
    %194 = math.tanh %193 : vector<8x32xf32>
    %195 = arith.mulf %190, %194 : vector<8x32xf32>
    %196 = arith.index_cast %176 : i32 to index
    %c0_50 = arith.constant 0 : index
    %197 = vector.load %arg10[%196, %c0_50] : memref<64x32xf32, #tpu.memory_space<vmem>>, vector<8x32xf32>
    tpu.vector_store %arg10[%196, %c0_50], %195 {strides = array<i32>} : memref<64x32xf32, #tpu.memory_space<vmem>>, vector<8x32xf32>,
    %c8_i32_51 = arith.constant 8 : i32
    %c0_52 = arith.constant 0 : index
    %c0_53 = arith.constant 0 : index
    %c0_54 = arith.constant 0 : index
    %198 = vector.load %arg7[%c0_52, %c0_53, %c0_54] : memref<2x8x32xf32, #tpu.memory_space<vmem>>, vector<1x8x32xf32>
    %199 = vector.shape_cast %198 : vector<1x8x32xf32> to vector<8x32xf32>
    %200 = vector.shape_cast %195 : vector<8x32xf32> to vector<1x8x32xf32>
    tpu.vector_store %arg7[%c0_52, %c0_53, %c0_54], %200 {strides = array<i32>} : memref<2x8x32xf32, #tpu.memory_space<vmem>>, vector<1x8x32xf32>,
    %c0_55 = arith.constant 0 : index
    %c0_56 = arith.constant 0 : index
    %c0_57 = arith.constant 0 : index
    %201 = vector.load %arg8[%c0_55, %c0_56, %c0_57] : memref<2x8x32xf32, #tpu.memory_space<vmem>>, vector<1x8x32xf32>
    %202 = vector.shape_cast %201 : vector<1x8x32xf32> to vector<8x32xf32>
    %203 = vector.shape_cast %193 : vector<8x32xf32> to vector<1x8x32xf32>
    tpu.vector_store %arg8[%c0_55, %c0_56, %c0_57], %203 {strides = array<i32>} : memref<2x8x32xf32, #tpu.memory_space<vmem>>, vector<1x8x32xf32>,
    %c0_58 = arith.constant 0 : index
    %c0_59 = arith.constant 0 : index
    %204 = vector.load %arg10[%c0_58, %c0_59] : memref<64x32xf32, #tpu.memory_space<vmem>>, vector<64x32xf32>
    %c1 = arith.constant 1 : index
    %c0_60 = arith.constant 0 : index
    %c0_61 = arith.constant 0 : index
    %205 = vector.load %arg4[%c1, %c0_60, %c0_61] : memref<2x65x128xf32, #tpu.memory_space<vmem>>, vector<1x65x128xf32>
    %206 = vector.shape_cast %205 : vector<1x65x128xf32> to vector<65x128xf32>
    %207 = vector.extract_strided_slice %206 {offsets = [0, 0], sizes = [32, 128], strides = [1, 1]} : vector<65x128xf32> to vector<32x128xf32>
    %208 = vector.extract_strided_slice %206 {offsets = [32, 0], sizes = [32, 128], strides = [1, 1]} : vector<65x128xf32> to vector<32x128xf32>
    %209 = vector.extract_strided_slice %206 {offsets = [64, 0], sizes = [1, 128], strides = [1, 1]} : vector<65x128xf32> to vector<1x128xf32>
    %cst_62 = arith.constant dense<0.000000e+00> : vector<64x128xf32>
    %210 = tpu.matmul %204, %207, %cst_62 {dimension_numbers = #tpu.dot_dimension_numbers<[1], [0], [0], [1], [0, 0, 1, 1], [], []>} : vector<64x32xf32>, vector<32x128xf32>, vector<64x128xf32> -> vector<64x128xf32>
    %211 = vector.broadcast %209 : vector<1x128xf32> to vector<64x128xf32>
    %212 = arith.addf %210, %211 : vector<64x128xf32>
    %c0_63 = arith.constant 0 : index
    %c0_64 = arith.constant 0 : index
    %213 = vector.load %arg9[%c0_63, %c0_64] : memref<64x128xf32, #tpu.memory_space<vmem>>, vector<64x128xf32>
    tpu.vector_store %arg9[%c0_63, %c0_64], %212 {strides = array<i32>} : memref<64x128xf32, #tpu.memory_space<vmem>>, vector<64x128xf32>,
    %c1_65 = arith.constant 1 : index
    %c0_66 = arith.constant 0 : index
    %c0_67 = arith.constant 0 : index
    %214 = vector.load %arg2[%c1_65, %c0_66, %c0_67] : memref<2x8x32xf32, #tpu.memory_space<vmem>>, vector<1x8x32xf32>
    %215 = vector.shape_cast %214 : vector<1x8x32xf32> to vector<8x32xf32>
    %c1_68 = arith.constant 1 : index
    %c0_69 = arith.constant 0 : index
    %c0_70 = arith.constant 0 : index
    %216 = vector.load %arg3[%c1_68, %c0_69, %c0_70] : memref<2x8x32xf32, #tpu.memory_space<vmem>>, vector<1x8x32xf32>
    %217 = vector.shape_cast %216 : vector<1x8x32xf32> to vector<8x32xf32>
    %c0_i32_71 = arith.constant 0 : i32
    %c8_i32_72 = arith.constant 8 : i32
    %218 = arith.muli %c0_i32_71, %c8_i32_72 : i32
    %219 = tpu.assume_multiple %218, 8 : i32
    %220 = arith.index_cast %219 : i32 to index
    %c0_73 = arith.constant 0 : index
    %221 = vector.load %arg9[%220, %c0_73] : memref<64x128xf32, #tpu.memory_space<vmem>>, vector<8x128xf32>
    %cst_74 = arith.constant dense<0.000000e+00> : vector<8x128xf32>
    %222 = tpu.matmul %215, %208, %cst_74 {dimension_numbers = #tpu.dot_dimension_numbers<[1], [0], [0], [1], [0, 0, 1, 1], [], []>} : vector<8x32xf32>, vector<32x128xf32>, vector<8x128xf32> -> vector<8x128xf32>
    %223 = arith.addf %221, %222 : vector<8x128xf32>
    %224 = arith.negf %223 : vector<8x128xf32>
    %225 = math.exp %224 : vector<8x128xf32>
    %cst_75 = arith.constant 1.000000e+00 : f32
    %226 = vector.broadcast %cst_75 : f32 to vector<8x128xf32>
    %227 = arith.addf %226, %225 : vector<8x128xf32>
    %228 = arith.divf %226, %227 : vector<8x128xf32>
    %229 = math.tanh %223 : vector<8x128xf32>
    %230 = vector.extract_strided_slice %228 {offsets = [0, 0], sizes = [8, 32], strides = [1, 1]} : vector<8x128xf32> to vector<8x32xf32>
    %231 = vector.extract_strided_slice %228 {offsets = [0, 32], sizes = [8, 32], strides = [1, 1]} : vector<8x128xf32> to vector<8x32xf32>
    %232 = vector.extract_strided_slice %229 {offsets = [0, 64], sizes = [8, 32], strides = [1, 1]} : vector<8x128xf32> to vector<8x32xf32>
    %233 = vector.extract_strided_slice %228 {offsets = [0, 96], sizes = [8, 32], strides = [1, 1]} : vector<8x128xf32> to vector<8x32xf32>
    %234 = arith.mulf %231, %217 : vector<8x32xf32>
    %235 = arith.mulf %230, %232 : vector<8x32xf32>
    %236 = arith.addf %234, %235 : vector<8x32xf32>
    %237 = math.tanh %236 : vector<8x32xf32>
    %238 = arith.mulf %233, %237 : vector<8x32xf32>
    %239 = arith.index_cast %219 : i32 to index
    %c0_76 = arith.constant 0 : index
    %240 = vector.load %arg10[%239, %c0_76] : memref<64x32xf32, #tpu.memory_space<vmem>>, vector<8x32xf32>
    tpu.vector_store %arg10[%239, %c0_76], %238 {strides = array<i32>} : memref<64x32xf32, #tpu.memory_space<vmem>>, vector<8x32xf32>,
    %c1_i32_77 = arith.constant 1 : i32
    %c8_i32_78 = arith.constant 8 : i32
    %241 = arith.muli %c1_i32_77, %c8_i32_78 : i32
    %242 = tpu.assume_multiple %241, 8 : i32
    %243 = arith.index_cast %242 : i32 to index
    %c0_79 = arith.constant 0 : index
    %244 = vector.load %arg9[%243, %c0_79] : memref<64x128xf32, #tpu.memory_space<vmem>>, vector<8x128xf32>
    %cst_80 = arith.constant dense<0.000000e+00> : vector<8x128xf32>
    %245 = tpu.matmul %238, %208, %cst_80 {dimension_numbers = #tpu.dot_dimension_numbers<[1], [0], [0], [1], [0, 0, 1, 1], [], []>} : vector<8x32xf32>, vector<32x128xf32>, vector<8x128xf32> -> vector<8x128xf32>
    %246 = arith.addf %244, %245 : vector<8x128xf32>
    %247 = arith.negf %246 : vector<8x128xf32>
    %248 = math.exp %247 : vector<8x128xf32>
    %cst_81 = arith.constant 1.000000e+00 : f32
    %249 = vector.broadcast %cst_81 : f32 to vector<8x128xf32>
    %250 = arith.addf %249, %248 : vector<8x128xf32>
    %251 = arith.divf %249, %250 : vector<8x128xf32>
    %252 = math.tanh %246 : vector<8x128xf32>
    %253 = vector.extract_strided_slice %251 {offsets = [0, 0], sizes = [8, 32], strides = [1, 1]} : vector<8x128xf32> to vector<8x32xf32>
    %254 = vector.extract_strided_slice %251 {offsets = [0, 32], sizes = [8, 32], strides = [1, 1]} : vector<8x128xf32> to vector<8x32xf32>
    %255 = vector.extract_strided_slice %252 {offsets = [0, 64], sizes = [8, 32], strides = [1, 1]} : vector<8x128xf32> to vector<8x32xf32>
    %256 = vector.extract_strided_slice %251 {offsets = [0, 96], sizes = [8, 32], strides = [1, 1]} : vector<8x128xf32> to vector<8x32xf32>
    %257 = arith.mulf %254, %236 : vector<8x32xf32>
    %258 = arith.mulf %253, %255 : vector<8x32xf32>
    %259 = arith.addf %257, %258 : vector<8x32xf32>
    %260 = math.tanh %259 : vector<8x32xf32>
    %261 = arith.mulf %256, %260 : vector<8x32xf32>
    %262 = arith.index_cast %242 : i32 to index
    %c0_82 = arith.constant 0 : index
    %263 = vector.load %arg10[%262, %c0_82] : memref<64x32xf32, #tpu.memory_space<vmem>>, vector<8x32xf32>
    tpu.vector_store %arg10[%262, %c0_82], %261 {strides = array<i32>} : memref<64x32xf32, #tpu.memory_space<vmem>>, vector<8x32xf32>,
    %c2_i32_83 = arith.constant 2 : i32
    %c8_i32_84 = arith.constant 8 : i32
    %264 = arith.muli %c2_i32_83, %c8_i32_84 : i32
    %265 = tpu.assume_multiple %264, 8 : i32
    %266 = arith.index_cast %265 : i32 to index
    %c0_85 = arith.constant 0 : index
    %267 = vector.load %arg9[%266, %c0_85] : memref<64x128xf32, #tpu.memory_space<vmem>>, vector<8x128xf32>
    %cst_86 = arith.constant dense<0.000000e+00> : vector<8x128xf32>
    %268 = tpu.matmul %261, %208, %cst_86 {dimension_numbers = #tpu.dot_dimension_numbers<[1], [0], [0], [1], [0, 0, 1, 1], [], []>} : vector<8x32xf32>, vector<32x128xf32>, vector<8x128xf32> -> vector<8x128xf32>
    %269 = arith.addf %267, %268 : vector<8x128xf32>
    %270 = arith.negf %269 : vector<8x128xf32>
    %271 = math.exp %270 : vector<8x128xf32>
    %cst_87 = arith.constant 1.000000e+00 : f32
    %272 = vector.broadcast %cst_87 : f32 to vector<8x128xf32>
    %273 = arith.addf %272, %271 : vector<8x128xf32>
    %274 = arith.divf %272, %273 : vector<8x128xf32>
    %275 = math.tanh %269 : vector<8x128xf32>
    %276 = vector.extract_strided_slice %274 {offsets = [0, 0], sizes = [8, 32], strides = [1, 1]} : vector<8x128xf32> to vector<8x32xf32>
    %277 = vector.extract_strided_slice %274 {offsets = [0, 32], sizes = [8, 32], strides = [1, 1]} : vector<8x128xf32> to vector<8x32xf32>
    %278 = vector.extract_strided_slice %275 {offsets = [0, 64], sizes = [8, 32], strides = [1, 1]} : vector<8x128xf32> to vector<8x32xf32>
    %279 = vector.extract_strided_slice %274 {offsets = [0, 96], sizes = [8, 32], strides = [1, 1]} : vector<8x128xf32> to vector<8x32xf32>
    %280 = arith.mulf %277, %259 : vector<8x32xf32>
    %281 = arith.mulf %276, %278 : vector<8x32xf32>
    %282 = arith.addf %280, %281 : vector<8x32xf32>
    %283 = math.tanh %282 : vector<8x32xf32>
    %284 = arith.mulf %279, %283 : vector<8x32xf32>
    %285 = arith.index_cast %265 : i32 to index
    %c0_88 = arith.constant 0 : index
    %286 = vector.load %arg10[%285, %c0_88] : memref<64x32xf32, #tpu.memory_space<vmem>>, vector<8x32xf32>
    tpu.vector_store %arg10[%285, %c0_88], %284 {strides = array<i32>} : memref<64x32xf32, #tpu.memory_space<vmem>>, vector<8x32xf32>,
    %c3_i32_89 = arith.constant 3 : i32
    %c8_i32_90 = arith.constant 8 : i32
    %287 = arith.muli %c3_i32_89, %c8_i32_90 : i32
    %288 = tpu.assume_multiple %287, 8 : i32
    %289 = arith.index_cast %288 : i32 to index
    %c0_91 = arith.constant 0 : index
    %290 = vector.load %arg9[%289, %c0_91] : memref<64x128xf32, #tpu.memory_space<vmem>>, vector<8x128xf32>
    %cst_92 = arith.constant dense<0.000000e+00> : vector<8x128xf32>
    %291 = tpu.matmul %284, %208, %cst_92 {dimension_numbers = #tpu.dot_dimension_numbers<[1], [0], [0], [1], [0, 0, 1, 1], [], []>} : vector<8x32xf32>, vector<32x128xf32>, vector<8x128xf32> -> vector<8x128xf32>
    %292 = arith.addf %290, %291 : vector<8x128xf32>
    %293 = arith.negf %292 : vector<8x128xf32>
    %294 = math.exp %293 : vector<8x128xf32>
    %cst_93 = arith.constant 1.000000e+00 : f32
    %295 = vector.broadcast %cst_93 : f32 to vector<8x128xf32>
    %296 = arith.addf %295, %294 : vector<8x128xf32>
    %297 = arith.divf %295, %296 : vector<8x128xf32>
    %298 = math.tanh %292 : vector<8x128xf32>
    %299 = vector.extract_strided_slice %297 {offsets = [0, 0], sizes = [8, 32], strides = [1, 1]} : vector<8x128xf32> to vector<8x32xf32>
    %300 = vector.extract_strided_slice %297 {offsets = [0, 32], sizes = [8, 32], strides = [1, 1]} : vector<8x128xf32> to vector<8x32xf32>
    %301 = vector.extract_strided_slice %298 {offsets = [0, 64], sizes = [8, 32], strides = [1, 1]} : vector<8x128xf32> to vector<8x32xf32>
    %302 = vector.extract_strided_slice %297 {offsets = [0, 96], sizes = [8, 32], strides = [1, 1]} : vector<8x128xf32> to vector<8x32xf32>
    %303 = arith.mulf %300, %282 : vector<8x32xf32>
    %304 = arith.mulf %299, %301 : vector<8x32xf32>
    %305 = arith.addf %303, %304 : vector<8x32xf32>
    %306 = math.tanh %305 : vector<8x32xf32>
    %307 = arith.mulf %302, %306 : vector<8x32xf32>
    %308 = arith.index_cast %288 : i32 to index
    %c0_94 = arith.constant 0 : index
    %309 = vector.load %arg10[%308, %c0_94] : memref<64x32xf32, #tpu.memory_space<vmem>>, vector<8x32xf32>
    tpu.vector_store %arg10[%308, %c0_94], %307 {strides = array<i32>} : memref<64x32xf32, #tpu.memory_space<vmem>>, vector<8x32xf32>,
    %c4_i32_95 = arith.constant 4 : i32
    %c8_i32_96 = arith.constant 8 : i32
    %310 = arith.muli %c4_i32_95, %c8_i32_96 : i32
    %311 = tpu.assume_multiple %310, 8 : i32
    %312 = arith.index_cast %311 : i32 to index
    %c0_97 = arith.constant 0 : index
    %313 = vector.load %arg9[%312, %c0_97] : memref<64x128xf32, #tpu.memory_space<vmem>>, vector<8x128xf32>
    %cst_98 = arith.constant dense<0.000000e+00> : vector<8x128xf32>
    %314 = tpu.matmul %307, %208, %cst_98 {dimension_numbers = #tpu.dot_dimension_numbers<[1], [0], [0], [1], [0, 0, 1, 1], [], []>} : vector<8x32xf32>, vector<32x128xf32>, vector<8x128xf32> -> vector<8x128xf32>
    %315 = arith.addf %313, %314 : vector<8x128xf32>
    %316 = arith.negf %315 : vector<8x128xf32>
    %317 = math.exp %316 : vector<8x128xf32>
    %cst_99 = arith.constant 1.000000e+00 : f32
    %318 = vector.broadcast %cst_99 : f32 to vector<8x128xf32>
    %319 = arith.addf %318, %317 : vector<8x128xf32>
    %320 = arith.divf %318, %319 : vector<8x128xf32>
    %321 = math.tanh %315 : vector<8x128xf32>
    %322 = vector.extract_strided_slice %320 {offsets = [0, 0], sizes = [8, 32], strides = [1, 1]} : vector<8x128xf32> to vector<8x32xf32>
    %323 = vector.extract_strided_slice %320 {offsets = [0, 32], sizes = [8, 32], strides = [1, 1]} : vector<8x128xf32> to vector<8x32xf32>
    %324 = vector.extract_strided_slice %321 {offsets = [0, 64], sizes = [8, 32], strides = [1, 1]} : vector<8x128xf32> to vector<8x32xf32>
    %325 = vector.extract_strided_slice %320 {offsets = [0, 96], sizes = [8, 32], strides = [1, 1]} : vector<8x128xf32> to vector<8x32xf32>
    %326 = arith.mulf %323, %305 : vector<8x32xf32>
    %327 = arith.mulf %322, %324 : vector<8x32xf32>
    %328 = arith.addf %326, %327 : vector<8x32xf32>
    %329 = math.tanh %328 : vector<8x32xf32>
    %330 = arith.mulf %325, %329 : vector<8x32xf32>
    %331 = arith.index_cast %311 : i32 to index
    %c0_100 = arith.constant 0 : index
    %332 = vector.load %arg10[%331, %c0_100] : memref<64x32xf32, #tpu.memory_space<vmem>>, vector<8x32xf32>
    tpu.vector_store %arg10[%331, %c0_100], %330 {strides = array<i32>} : memref<64x32xf32, #tpu.memory_space<vmem>>, vector<8x32xf32>,
    %c5_i32_101 = arith.constant 5 : i32
    %c8_i32_102 = arith.constant 8 : i32
    %333 = arith.muli %c5_i32_101, %c8_i32_102 : i32
    %334 = tpu.assume_multiple %333, 8 : i32
    %335 = arith.index_cast %334 : i32 to index
    %c0_103 = arith.constant 0 : index
    %336 = vector.load %arg9[%335, %c0_103] : memref<64x128xf32, #tpu.memory_space<vmem>>, vector<8x128xf32>
    %cst_104 = arith.constant dense<0.000000e+00> : vector<8x128xf32>
    %337 = tpu.matmul %330, %208, %cst_104 {dimension_numbers = #tpu.dot_dimension_numbers<[1], [0], [0], [1], [0, 0, 1, 1], [], []>} : vector<8x32xf32>, vector<32x128xf32>, vector<8x128xf32> -> vector<8x128xf32>
    %338 = arith.addf %336, %337 : vector<8x128xf32>
    %339 = arith.negf %338 : vector<8x128xf32>
    %340 = math.exp %339 : vector<8x128xf32>
    %cst_105 = arith.constant 1.000000e+00 : f32
    %341 = vector.broadcast %cst_105 : f32 to vector<8x128xf32>
    %342 = arith.addf %341, %340 : vector<8x128xf32>
    %343 = arith.divf %341, %342 : vector<8x128xf32>
    %344 = math.tanh %338 : vector<8x128xf32>
    %345 = vector.extract_strided_slice %343 {offsets = [0, 0], sizes = [8, 32], strides = [1, 1]} : vector<8x128xf32> to vector<8x32xf32>
    %346 = vector.extract_strided_slice %343 {offsets = [0, 32], sizes = [8, 32], strides = [1, 1]} : vector<8x128xf32> to vector<8x32xf32>
    %347 = vector.extract_strided_slice %344 {offsets = [0, 64], sizes = [8, 32], strides = [1, 1]} : vector<8x128xf32> to vector<8x32xf32>
    %348 = vector.extract_strided_slice %343 {offsets = [0, 96], sizes = [8, 32], strides = [1, 1]} : vector<8x128xf32> to vector<8x32xf32>
    %349 = arith.mulf %346, %328 : vector<8x32xf32>
    %350 = arith.mulf %345, %347 : vector<8x32xf32>
    %351 = arith.addf %349, %350 : vector<8x32xf32>
    %352 = math.tanh %351 : vector<8x32xf32>
    %353 = arith.mulf %348, %352 : vector<8x32xf32>
    %354 = arith.index_cast %334 : i32 to index
    %c0_106 = arith.constant 0 : index
    %355 = vector.load %arg10[%354, %c0_106] : memref<64x32xf32, #tpu.memory_space<vmem>>, vector<8x32xf32>
    tpu.vector_store %arg10[%354, %c0_106], %353 {strides = array<i32>} : memref<64x32xf32, #tpu.memory_space<vmem>>, vector<8x32xf32>,
    %c6_i32_107 = arith.constant 6 : i32
    %c8_i32_108 = arith.constant 8 : i32
    %356 = arith.muli %c6_i32_107, %c8_i32_108 : i32
    %357 = tpu.assume_multiple %356, 8 : i32
    %358 = arith.index_cast %357 : i32 to index
    %c0_109 = arith.constant 0 : index
    %359 = vector.load %arg9[%358, %c0_109] : memref<64x128xf32, #tpu.memory_space<vmem>>, vector<8x128xf32>
    %cst_110 = arith.constant dense<0.000000e+00> : vector<8x128xf32>
    %360 = tpu.matmul %353, %208, %cst_110 {dimension_numbers = #tpu.dot_dimension_numbers<[1], [0], [0], [1], [0, 0, 1, 1], [], []>} : vector<8x32xf32>, vector<32x128xf32>, vector<8x128xf32> -> vector<8x128xf32>
    %361 = arith.addf %359, %360 : vector<8x128xf32>
    %362 = arith.negf %361 : vector<8x128xf32>
    %363 = math.exp %362 : vector<8x128xf32>
    %cst_111 = arith.constant 1.000000e+00 : f32
    %364 = vector.broadcast %cst_111 : f32 to vector<8x128xf32>
    %365 = arith.addf %364, %363 : vector<8x128xf32>
    %366 = arith.divf %364, %365 : vector<8x128xf32>
    %367 = math.tanh %361 : vector<8x128xf32>
    %368 = vector.extract_strided_slice %366 {offsets = [0, 0], sizes = [8, 32], strides = [1, 1]} : vector<8x128xf32> to vector<8x32xf32>
    %369 = vector.extract_strided_slice %366 {offsets = [0, 32], sizes = [8, 32], strides = [1, 1]} : vector<8x128xf32> to vector<8x32xf32>
    %370 = vector.extract_strided_slice %367 {offsets = [0, 64], sizes = [8, 32], strides = [1, 1]} : vector<8x128xf32> to vector<8x32xf32>
    %371 = vector.extract_strided_slice %366 {offsets = [0, 96], sizes = [8, 32], strides = [1, 1]} : vector<8x128xf32> to vector<8x32xf32>
    %372 = arith.mulf %369, %351 : vector<8x32xf32>
    %373 = arith.mulf %368, %370 : vector<8x32xf32>
    %374 = arith.addf %372, %373 : vector<8x32xf32>
    %375 = math.tanh %374 : vector<8x32xf32>
    %376 = arith.mulf %371, %375 : vector<8x32xf32>
    %377 = arith.index_cast %357 : i32 to index
    %c0_112 = arith.constant 0 : index
    %378 = vector.load %arg10[%377, %c0_112] : memref<64x32xf32, #tpu.memory_space<vmem>>, vector<8x32xf32>
    tpu.vector_store %arg10[%377, %c0_112], %376 {strides = array<i32>} : memref<64x32xf32, #tpu.memory_space<vmem>>, vector<8x32xf32>,
    %c7_i32_113 = arith.constant 7 : i32
    %c8_i32_114 = arith.constant 8 : i32
    %379 = arith.muli %c7_i32_113, %c8_i32_114 : i32
    %380 = tpu.assume_multiple %379, 8 : i32
    %381 = arith.index_cast %380 : i32 to index
    %c0_115 = arith.constant 0 : index
    %382 = vector.load %arg9[%381, %c0_115] : memref<64x128xf32, #tpu.memory_space<vmem>>, vector<8x128xf32>
    %cst_116 = arith.constant dense<0.000000e+00> : vector<8x128xf32>
    %383 = tpu.matmul %376, %208, %cst_116 {dimension_numbers = #tpu.dot_dimension_numbers<[1], [0], [0], [1], [0, 0, 1, 1], [], []>} : vector<8x32xf32>, vector<32x128xf32>, vector<8x128xf32> -> vector<8x128xf32>
    %384 = arith.addf %382, %383 : vector<8x128xf32>
    %385 = arith.negf %384 : vector<8x128xf32>
    %386 = math.exp %385 : vector<8x128xf32>
    %cst_117 = arith.constant 1.000000e+00 : f32
    %387 = vector.broadcast %cst_117 : f32 to vector<8x128xf32>
    %388 = arith.addf %387, %386 : vector<8x128xf32>
    %389 = arith.divf %387, %388 : vector<8x128xf32>
    %390 = math.tanh %384 : vector<8x128xf32>
    %391 = vector.extract_strided_slice %389 {offsets = [0, 0], sizes = [8, 32], strides = [1, 1]} : vector<8x128xf32> to vector<8x32xf32>
    %392 = vector.extract_strided_slice %389 {offsets = [0, 32], sizes = [8, 32], strides = [1, 1]} : vector<8x128xf32> to vector<8x32xf32>
    %393 = vector.extract_strided_slice %390 {offsets = [0, 64], sizes = [8, 32], strides = [1, 1]} : vector<8x128xf32> to vector<8x32xf32>
    %394 = vector.extract_strided_slice %389 {offsets = [0, 96], sizes = [8, 32], strides = [1, 1]} : vector<8x128xf32> to vector<8x32xf32>
    %395 = arith.mulf %392, %374 : vector<8x32xf32>
    %396 = arith.mulf %391, %393 : vector<8x32xf32>
    %397 = arith.addf %395, %396 : vector<8x32xf32>
    %398 = math.tanh %397 : vector<8x32xf32>
    %399 = arith.mulf %394, %398 : vector<8x32xf32>
    %400 = arith.index_cast %380 : i32 to index
    %c0_118 = arith.constant 0 : index
    %401 = vector.load %arg10[%400, %c0_118] : memref<64x32xf32, #tpu.memory_space<vmem>>, vector<8x32xf32>
    tpu.vector_store %arg10[%400, %c0_118], %399 {strides = array<i32>} : memref<64x32xf32, #tpu.memory_space<vmem>>, vector<8x32xf32>,
    %c8_i32_119 = arith.constant 8 : i32
    %c1_120 = arith.constant 1 : index
    %c0_121 = arith.constant 0 : index
    %c0_122 = arith.constant 0 : index
    %402 = vector.load %arg7[%c1_120, %c0_121, %c0_122] : memref<2x8x32xf32, #tpu.memory_space<vmem>>, vector<1x8x32xf32>
    %403 = vector.shape_cast %402 : vector<1x8x32xf32> to vector<8x32xf32>
    %404 = vector.shape_cast %399 : vector<8x32xf32> to vector<1x8x32xf32>
    tpu.vector_store %arg7[%c1_120, %c0_121, %c0_122], %404 {strides = array<i32>} : memref<2x8x32xf32, #tpu.memory_space<vmem>>, vector<1x8x32xf32>,
    %c1_123 = arith.constant 1 : index
    %c0_124 = arith.constant 0 : index
    %c0_125 = arith.constant 0 : index
    %405 = vector.load %arg8[%c1_123, %c0_124, %c0_125] : memref<2x8x32xf32, #tpu.memory_space<vmem>>, vector<1x8x32xf32>
    %406 = vector.shape_cast %405 : vector<1x8x32xf32> to vector<8x32xf32>
    %407 = vector.shape_cast %397 : vector<8x32xf32> to vector<1x8x32xf32>
    tpu.vector_store %arg8[%c1_123, %c0_124, %c0_125], %407 {strides = array<i32>} : memref<2x8x32xf32, #tpu.memory_space<vmem>>, vector<1x8x32xf32>,
    %c0_126 = arith.constant 0 : index
    %c0_127 = arith.constant 0 : index
    %408 = vector.load %arg10[%c0_126, %c0_127] : memref<64x32xf32, #tpu.memory_space<vmem>>, vector<64x32xf32>
    %c0_128 = arith.constant 0 : index
    %c0_129 = arith.constant 0 : index
    %409 = vector.load %arg5[%c0_128, %c0_129] : memref<33x256xf32, #tpu.memory_space<vmem>>, vector<32x32xf32>
    %c32 = arith.constant 32 : index
    %c0_130 = arith.constant 0 : index
    %410 = vector.load %arg5[%c32, %c0_130] : memref<33x256xf32, #tpu.memory_space<vmem>>, vector<1x32xf32>
    %c0_131 = arith.constant 0 : index
    %c128 = arith.constant 128 : index
    %411 = vector.load %arg5[%c0_131, %c128] : memref<33x256xf32, #tpu.memory_space<vmem>>, vector<32x128xf32>
    %c32_132 = arith.constant 32 : index
    %c128_133 = arith.constant 128 : index
    %412 = vector.load %arg5[%c32_132, %c128_133] : memref<33x256xf32, #tpu.memory_space<vmem>>, vector<1x128xf32>
    %cst_134 = arith.constant dense<0.000000e+00> : vector<64x32xf32>
    %413 = tpu.matmul %408, %409, %cst_134 {dimension_numbers = #tpu.dot_dimension_numbers<[1], [0], [0], [1], [0, 0, 1, 1], [], []>} : vector<64x32xf32>, vector<32x32xf32>, vector<64x32xf32> -> vector<64x32xf32>
    %414 = vector.broadcast %410 : vector<1x32xf32> to vector<64x32xf32>
    %415 = arith.addf %413, %414 : vector<64x32xf32>
    %cst_135 = arith.constant 0.000000e+00 : f32
    %416 = vector.broadcast %cst_135 : f32 to vector<64x32xf32>
    %417 = arith.maximumf %415, %416 : vector<64x32xf32>
    %cst_136 = arith.constant dense<0.000000e+00> : vector<64x128xf32>
    %418 = tpu.matmul %417, %411, %cst_136 {dimension_numbers = #tpu.dot_dimension_numbers<[1], [0], [0], [1], [0, 0, 1, 1], [], []>} : vector<64x32xf32>, vector<32x128xf32>, vector<64x128xf32> -> vector<64x128xf32>
    %419 = vector.broadcast %412 : vector<1x128xf32> to vector<64x128xf32>
    %420 = arith.addf %418, %419 : vector<64x128xf32>
    %c0_137 = arith.constant 0 : index
    %c0_138 = arith.constant 0 : index
    %421 = vector.load %arg6[%c0_137, %c0_138] : memref<64x128xf32, #tpu.memory_space<vmem>>, vector<64x128xf32>
    tpu.vector_store %arg6[%c0_137, %c0_138], %420 {strides = array<i32>} : memref<64x128xf32, #tpu.memory_space<vmem>>, vector<64x128xf32>,
    return
  }
  func.func @transform_0(%arg0: i32) -> (i32, i32) {
    %c0_i32 = arith.constant 0 : i32
    %c0_i32_0 = arith.constant 0 : i32
    %c0_i32_1 = arith.constant 0 : i32
    return %c0_i32, %c0_i32_0 : i32, i32
  }
  func.func @transform_1(%arg0: i32) -> (i32, i32, i32) {
    %c0_i32 = arith.constant 0 : i32
    %c0_i32_0 = arith.constant 0 : i32
    %c0_i32_1 = arith.constant 0 : i32
    %c0_i32_2 = arith.constant 0 : i32
    return %c0_i32, %c0_i32_0, %c0_i32_1 : i32, i32, i32
  }
  func.func @transform_2(%arg0: i32) -> (i32, i32, i32) {
    %c0_i32 = arith.constant 0 : i32
    %c0_i32_0 = arith.constant 0 : i32
    %c0_i32_1 = arith.constant 0 : i32
    %c0_i32_2 = arith.constant 0 : i32
    return %c0_i32, %c0_i32_0, %c0_i32_1 : i32, i32, i32
  }
  func.func @transform_3(%arg0: i32) -> (i32, i32, i32) {
    %c0_i32 = arith.constant 0 : i32
    %c0_i32_0 = arith.constant 0 : i32
    %c0_i32_1 = arith.constant 0 : i32
    %c0_i32_2 = arith.constant 0 : i32
    return %c0_i32, %c0_i32_0, %c0_i32_1 : i32, i32, i32
  }
  func.func @transform_4(%arg0: i32) -> (i32, i32) {
    %c0_i32 = arith.constant 0 : i32
    %c0_i32_0 = arith.constant 0 : i32
    %c0_i32_1 = arith.constant 0 : i32
    return %c0_i32, %c0_i32_0 : i32, i32
  }
  func.func @transform_5(%arg0: i32) -> (i32, i32) {
    %c0_i32 = arith.constant 0 : i32
    %c0_i32_0 = arith.constant 0 : i32
    %c0_i32_1 = arith.constant 0 : i32
    return %c0_i32, %c0_i32_0 : i32, i32
  }
  func.func @transform_6(%arg0: i32) -> (i32, i32, i32) {
    %c0_i32 = arith.constant 0 : i32
    %c0_i32_0 = arith.constant 0 : i32
    %c0_i32_1 = arith.constant 0 : i32
    %c0_i32_2 = arith.constant 0 : i32
    return %c0_i32, %c0_i32_0, %c0_i32_1 : i32, i32, i32
  }
  func.func @transform_7(%arg0: i32) -> (i32, i32, i32) {
    %c0_i32 = arith.constant 0 : i32
    %c0_i32_0 = arith.constant 0 : i32
    %c0_i32_1 = arith.constant 0 : i32
    %c0_i32_2 = arith.constant 0 : i32
    return %c0_i32, %c0_i32_0, %c0_i32_1 : i32, i32, i32
  }
}

</mosaic_0001>

<bundles_post_ra>
// kernel: lstm_model_forward.1
= control target key start
LH: loop header
LB: loop body
LE: loop exit
PB: predicated region body
PF: predicated region fallthrough
CT: control target
= control target key end

     0   :  { %v3062_v2 = vmov 0.0|0.0   ;;  %vm44_vm0 = vcmask 261120   ;;  %vm3063_vm1 = vmmov 0   ;;  %v3064_v4 = vmov 0.0   ;;  %s3065_s25 = smov 64   ;;  %s3066_s28 = smov 32   ;;  %s3587_s3 = inlined_call_operand.vmem [shape: f32[2,65,128], index: 3, kind: input, shape index: {}]   ;;  %s3588_s0 = inlined_call_operand.vmem [shape: f32[64,32], index: 0, kind: input, shape index: {}]   ;;  %s3589_s1 = inlined_call_operand.vmem [shape: f32[2,8,32], index: 1, kind: input, shape index: {}]   ;;  %s3590_s2 = inlined_call_operand.vmem [shape: f32[2,8,32], index: 2, kind: input, shape index: {}]   ;;  %s3591_s6 = inlined_call_operand.vmem [shape: f32[2,8,32], index: 6, kind: output, shape index: {1}]   ;;  %s3592_s4 = inlined_call_operand.vmem [shape: f32[33,256], index: 4, kind: input, shape index: {}]   ;;  %s3593_s5 = inlined_call_operand.vmem [shape: f32[64,128], index: 5, kind: output, shape index: {0}]   ;;  %s3594_s7 = inlined_call_operand.vmem [shape: f32[2,8,32], index: 7, kind: output, shape index: {2}]  }
   0x1   :  { %v31_v0 = vld [vmem:[%s3587_s3] sm:$0xff]  ;;  %v32_v1 = vld [vmem:[%s3587_s3 + $0x8] sm:$0xff]  ;;  %2808 = vmatprep.subr.bf16.mxu1 %v3062_v2  ;;  %2572 = vmatprep.mubr.msk.f32.mxu1 %vm3063_vm1, %v3064_v4  ;;  %v33_v7 = vld [vmem:[%s3587_s3 + $0x10] sm:$0xff]  ;;  %s3067_s22 = smov 96  }
   0x2   :  { %v35_v3 = vld [vmem:[%s3587_s3 + $0x20] sm:$0xff]  ;;  %v2800_v5 = vpack.c.bf16 %v32_v1, %v31_v0  ;;  %v36_v6 = vld [vmem:[%s3587_s3 + $0x28] sm:$0xff]  ;;  %v34_v8 = vld [vmem:[%s3587_s3 + $0x18] sm:$0xff] }
   0x3   :  { %v3129_v9 = vpack.c.bf16 %v36_v6, %v35_v3  ;;  %v2804_v10 = vpack.c.bf16 %v34_v8, %v33_v7  ;;  %v23_v11 = vld [vmem:[%s3588_s0] sm:$0xff]  ;;  %v37_v12 = vld [vmem:[%s3587_s3 + $0x30] sm:$0xff]  ;;  %v38_v13 = vld [vmem:[%s3587_s3 + $0x38] sm:$0xff] }
   0x4   :  { %2801 = vmatprep.subr.bf16.mxu0 %v2800_v5  ;;  %2552 = vmatprep.mubr.msk.f32.mxu0 %vm44_vm0, %v23_v11  ;;  %v3142_v14 = vpack.c.bf16 %v38_v13, %v37_v12  ;;  %v24_v15 = vld [vmem:[%s3588_s0 + $0x8] sm:$0xff]  ;;  %v182_v16 = vld [vmem:[%s3589_s1] sm:$0xff]  ;;  %v25_v54 = vld [vmem:[%s3588_s0 + $0x10] sm:$0xff] }
   0x5   :  { %2803 = vmatpush3.bf16.msra.mxu0 %v2800_v5  ;;  %2810 = vmatpush3.bf16.msra.mxu1 %v3129_v9  ;;  %v3169_v17 = vld [vmem:[%s3587_s3 + $0x40] ss:$0 sm:$0xff]  ;;  %v26_v55 = vld [vmem:[%s3588_s0 + $0x18] sm:$0xff]  ;;  %v28_v57 = vld [vmem:[%s3588_s0 + $0x28] sm:$0xff] }
   0x6   :  { %2805 = vmatprep.subr.bf16.mxu0 %v2804_v10  ;;  %2811 = vmatprep.subr.bf16.mxu1 %v3062_v2  ;;  %v183_v25 = vld [vmem:[%s3590_s2] sm:$0xff]  ;;  %v29_v58 = vld [vmem:[%s3588_s0 + $0x30] sm:$0xff]  ;;  %v30_v59 = vld [vmem:[%s3588_s0 + $0x38] sm:$0xff] }
   0x7   :  { %v27_v56 = vld [vmem:[%s3588_s0 + $0x20] sm:$0xff] }
   0x9   :  { %2807 = vmatpush3.bf16.msra.mxu0 %v2804_v10  ;;  %2813 = vmatpush3.bf16.msra.mxu1 %v3142_v14 }
   0xa   :  { %2814 = vmatprep.subr.bf16.mxu1 %v3062_v2  ;;  %2820 = vmatprep.subr.bf16.mxu0 %v3062_v2 }
   0xc   :  { %2553 = vmatmul.mubr.msk.f32.vlgmr.msra.gmra.mrb[0].mxu0 %vm44_vm0, %v24_v15  ;;  %2573 = vmatmul.mubr.msk.f32.vlgmr.msra.gmra.mrb[0].mxu1 %vm44_vm0, %v182_v16 }
   0xd   :  { %2816 = vmatpush3.bf16.msra.mxu1 %v3129_v9  ;;  %2583 = vmatprep.mubr.msk.f32.mxu1 %vm3063_vm1, %v3064_v4 }
   0xe   :  { %2817 = vmatprep.subr.bf16.mxu1 %v3062_v2  ;;  %2822 = vmatpush3.bf16.msra.mxu0 %v3129_v9 }
   0xf   :  { %2823 = vmatprep.subr.bf16.mxu0 %v3062_v2  ;;  %2555 = vmatprep.mubr.msk.f32.mxu0 %vm44_vm0, %v25_v54 }
  0x10   :  { %2556 = vmatmul.mubr.msk.f32.gmra.mrb[2].mxu0 %vm44_vm0, %v26_v55 }
  0x11   :  { %2819 = vmatpush3.bf16.msra.mxu1 %v3142_v14  ;;  %2558 = vmatprep.mubr.msk.f32.mxu0 %vm44_vm0, %v27_v56 }
  0x12   :  { %2825 = vmatpush3.bf16.msra.mxu0 %v3142_v14  ;;  %2826 = vmatprep.subr.bf16.mxu1 %v3062_v2 }
  0x13   :  { %2832 = vmatprep.subr.bf16.mxu0 %v3062_v2 }
  0x14   :  { %2559 = vmatmul.mubr.msk.f32.gmra.mrb[4].mxu0 %vm44_vm0, %v28_v57 }
  0x15   :  { %2561 = vmatprep.mubr.msk.f32.mxu0 %vm44_vm0, %v29_v58 }
  0x18   :  { %2562 = vmatmul.mubr.msk.f32.gmra.mrb[6].mxu0 %vm44_vm0, %v30_v59 }
  0x19   :  { %2594 = vmatprep.mubr.msk.f32.mxu0 %vm3063_vm1, %v3064_v4 }
  0xdf   :  { %v2554_v18 = vpop.f32.mrb[0].mxu0  ;;  %v254_v19 = vpop.f32.mrb[0].mxu1 }
  0xe0   :  { %v135_v20 = vpop.f32.mrb[1].mxu0  ;;  %v2574_v21 = vpop.f32.mrb[1].mxu1  ;;  %v141_v40 = vadd.f32 %v2554_v18, %v3169_v17 }
  0xe1   :  { %v136_v22 = vadd.f32 %v3169_v17, %v135_v20 }
  0xe3   :  { %v258_v23 = vadd.f32 %v254_v19, %v136_v22  ;;  %v2557_v63 = vpop.f32.mrb[2].mxu0 }
  0xe4   :  { %v145_v0 = vpop.f32.mrb[3].mxu0 }
  0xe5   :  { %2934 = vtanh.f32 %v258_v23  ;;  %v2347_v26 = vmul.f32 -1.442695, %v258_v23  ;;  %v146_v8 = vadd.f32 %v3169_v17, %v145_v0 }
  0xe7   :  { %2936 = vpow2.f32 %v2347_v26  ;;  %v3219_v1 = vpop.f32.mrb[4].mxu0 }
  0xe8   :  { %v3221_v3 = vpop.f32.mrb[5].mxu0 }
  0xeb   :  { %v3223_v5 = vpop.f32.mrb[6].mxu0 }
  0xec   :  { %v3225_v6 = vpop.f32.mrb[7].mxu0 }
  0xef   :  { %v2935_v24 = vpop.eup %2934 }
  0xf0   :  { %272 = vrot.lane.b32.xlu0 %v2935_v24, %s3065_s25 }
  0xf1   :  { %v2937_v27 = vpop.eup %2936 }
  0xf2   :  { %v262_v28 = vadd.f32 1.0, %v2937_v27 }
  0xf4   :  { %267 = vrot.lane.b32.xlu0 %v183_v25, %s3066_s28  ;;  %2938 = vrcp.f32 %v262_v28 }
  0xfe   :  { %v2939_v29 = vpop.eup %2938 }
 0x162   :  { %v273_v30 = vpop.permute.xlu0 %272 }
 0x163   :  { %v275_v31 = vmul.f32 %v2939_v29, %v273_v30 }
 0x165   :  { %277 = vrot.lane.b32.xlu1 %v275_v31, %s3066_s28 }
 0x166   :  { %v268_v32 = vpop.permute.xlu0 %267 }
 0x167   :  { %v270_v33 = vmul.f32 %v2939_v29, %v268_v32 }
 0x1d7   :  { %v278_v34 = vpop.permute.xlu1 %277 }
 0x1d8   :  { %v280_v35 = vadd.f32 %v278_v34, %v270_v33 }
 0x1da   :  { %2940 = vtanh.f32 %v280_v35 }
 0x1e4   :  { %v2941_v36 = vpop.eup %2940 }
 0x1e5   :  { %283 = vrot.lane.b32.xlu1 %v2941_v36, %s3065_s25 }
 0x257   :  { %v284_v37 = vpop.permute.xlu1 %283 }
 0x258   :  { %v286_v38 = vmul.f32 %v2939_v29, %v284_v37  ;;  %v151_v29 = vadd.f32 %v2557_v63, %v3169_v17 }
 0x25a   :  { %288 = vrot.lane.b32.xlu0 %v286_v38, %s3066_s28 }
 0x2cc   :  { %v289_v39 = vpop.permute.xlu0 %288 }
 0x2cd   :  { %291 = vst.msk [vmem:[#allocation3] sm:$0xff] %vm44_vm0, %v289_v39  ;;  %2584 = vmatmul.mubr.msk.f32.vlgmr.msra.gmra.mrb[2].mxu1 %vm44_vm0, %v289_v39 }
 0x2ce   :  { %2828 = vmatpush3.bf16.msra.mxu1 %v3129_v9  ;;  %2605 = vmatprep.mubr.msk.f32.mxu1 %vm3063_vm1, %v3064_v4 }
 0x2cf   :  { %2829 = vmatprep.subr.bf16.mxu1 %v3062_v2 }
 0x2d2   :  { %2831 = vmatpush3.bf16.msra.mxu1 %v3142_v14 }
 0x2d3   :  { %2838 = vmatprep.subr.bf16.mxu1 %v3062_v2 }
 0x3a0   :  { %v362_v41 = vpop.f32.mrb[2].mxu1 }
 0x3a1   :  { %v366_v42 = vadd.f32 %v362_v41, %v141_v40  ;;  %v2585_v43 = vpop.f32.mrb[3].mxu1 }
 0x3a3   :  { %2942 = vtanh.f32 %v366_v42  ;;  %v2349_v45 = vmul.f32 -1.442695, %v366_v42 }
 0x3a5   :  { %2944 = vpow2.f32 %v2349_v45 }
 0x3ad   :  { %v2943_v44 = vpop.eup %2942 }
 0x3ae   :  { %376 = vrot.lane.b32.xlu1 %v2943_v44, %s3065_s25 }
 0x3af   :  { %v2945_v46 = vpop.eup %2944 }
 0x3b0   :  { %v370_v47 = vadd.f32 1.0, %v2945_v46 }
 0x3b2   :  { %2946 = vrcp.f32 %v370_v47  ;;  %v156_v47 = vadd.f32 %v3169_v17, %v3221_v3  ;;  %v161_v3 = vadd.f32 %v3219_v1, %v3169_v17 }
 0x3bc   :  { %v2947_v48 = vpop.eup %2946 }
 0x3bd   :  { %v374_v51 = vmul.f32 %v2947_v48, %v280_v35 }
 0x420   :  { %v377_v49 = vpop.permute.xlu1 %376 }
 0x421   :  { %v379_v50 = vmul.f32 %v2947_v48, %v377_v49 }
 0x423   :  { %381 = vrot.lane.b32.xlu0 %v379_v50, %s3066_s28 }
 0x495   :  { %v382_v52 = vpop.permute.xlu0 %381 }
 0x496   :  { %v384_v53 = vadd.f32 %v382_v52, %v374_v51 }
 0x498   :  { %2948 = vtanh.f32 %v384_v53 }
 0x4a2   :  { %v2949_v60 = vpop.eup %2948 }
 0x4a3   :  { %387 = vrot.lane.b32.xlu1 %v2949_v60, %s3065_s25 }
 0x515   :  { %v388_v61 = vpop.permute.xlu1 %387 }
 0x516   :  { %v390_v62 = vmul.f32 %v2947_v48, %v388_v61 }
 0x518   :  { %392 = vrot.lane.b32.xlu0 %v390_v62, %s3066_s28 }
 0x58a   :  { %v393_v7 = vpop.permute.xlu0 %392 }
 0x58b   :  { %396 = vst.msk [vmem:[#allocation3 + $0x8] sm:$0xff] %vm44_vm0, %v393_v7  ;;  %2595 = vmatmul.mubr.msk.f32.vlgmr.msra.gmra.mrb[8].mxu0 %vm44_vm0, %v393_v7 }
 0x58c   :  { %2834 = vmatpush3.bf16.msra.mxu0 %v3129_v9  ;;  %2616 = vmatprep.mubr.msk.f32.mxu0 %vm3063_vm1, %v3064_v4 }
 0x58d   :  { %2835 = vmatprep.subr.bf16.mxu0 %v3062_v2 }
 0x590   :  { %2837 = vmatpush3.bf16.msra.mxu0 %v3142_v14 }
 0x591   :  { %2844 = vmatprep.subr.bf16.mxu0 %v3062_v2 }
 0x65e   :  { %v467_v10 = vpop.f32.mrb[8].mxu0 }
 0x65f   :  { %v471_v11 = vadd.f32 %v467_v10, %v146_v8  ;;  %v2596_v12 = vpop.f32.mrb[9].mxu0 }
 0x661   :  { %2950 = vtanh.f32 %v471_v11  ;;  %v2351_v15 = vmul.f32 -1.442695, %v471_v11 }
 0x663   :  { %2952 = vpow2.f32 %v2351_v15 }
 0x66b   :  { %v2951_v13 = vpop.eup %2950 }
 0x66c   :  { %481 = vrot.lane.b32.xlu1 %v2951_v13, %s3065_s25 }
 0x66d   :  { %v2953_v16 = vpop.eup %2952 }
 0x66e   :  { %v475_v18 = vadd.f32 1.0, %v2953_v16 }
 0x670   :  { %2954 = vrcp.f32 %v475_v18 }
 0x67a   :  { %v2955_v19 = vpop.eup %2954 }
 0x67b   :  { %v479_v22 = vmul.f32 %v2955_v19, %v384_v53 }
 0x6de   :  { %v482_v20 = vpop.permute.xlu1 %481 }
 0x6df   :  { %v484_v21 = vmul.f32 %v2955_v19, %v482_v20  ;;  %v2362_v20 = vld [vmem:[%s3587_s3 + $0x48] sm:$0xff] }
 0x6e1   :  { %486 = vrot.lane.b32.xlu0 %v484_v21, %s3066_s28  ;;  %v2363_v21 = vld [vmem:[%s3587_s3 + $0x50] sm:$0xff] }
 0x753   :  { %v487_v23 = vpop.permute.xlu0 %486 }
 0x754   :  { %v489_v24 = vadd.f32 %v487_v23, %v479_v22  ;;  %v2856_v22 = vpack.c.bf16 %v2363_v21, %v2362_v20 }
 0x756   :  { %2956 = vtanh.f32 %v489_v24 }
 0x760   :  { %v2957_v25 = vpop.eup %2956 }
 0x761   :  { %492 = vrot.lane.b32.xlu1 %v2957_v25, %s3065_s25 }
 0x7d3   :  { %v493_v26 = vpop.permute.xlu1 %492 }
 0x7d4   :  { %v495_v27 = vmul.f32 %v2955_v19, %v493_v26  ;;  %v2364_v26 = vld [vmem:[%s3587_s3 + $0x58] sm:$0xff] }
 0x7d6   :  { %497 = vrot.lane.b32.xlu0 %v495_v27, %s3066_s28  ;;  %v2365_v27 = vld [vmem:[%s3587_s3 + $0x60] sm:$0xff] }
 0x848   :  { %v498_v28 = vpop.permute.xlu0 %497 }
 0x849   :  { %501 = vst.msk [vmem:[#allocation3 + $0x10] sm:$0xff] %vm44_vm0, %v498_v28  ;;  %2606 = vmatmul.mubr.msk.f32.vlgmr.msra.gmra.mrb[4].mxu1 %vm44_vm0, %v498_v28  ;;  %v2860_v28 = vpack.c.bf16 %v2365_v27, %v2364_v26 }
 0x84a   :  { %2840 = vmatpush3.bf16.msra.mxu1 %v3129_v9  ;;  %2627 = vmatprep.mubr.msk.f32.mxu1 %vm3063_vm1, %v3064_v4 }
 0x84b   :  { %2841 = vmatprep.subr.bf16.mxu1 %v3062_v2 }
 0x84e   :  { %2843 = vmatpush3.bf16.msra.mxu1 %v3142_v14 }
 0x84f   :  { %2850 = vmatprep.subr.bf16.mxu1 %v3062_v2 }
 0x91c   :  { %v572_v30 = vpop.f32.mrb[4].mxu1 }
 0x91d   :  { %v576_v31 = vadd.f32 %v572_v30, %v151_v29  ;;  %v2607_v32 = vpop.f32.mrb[5].mxu1  ;;  %v1033_v30 = vld [vmem:[#allocation3] sm:$0xff] }
 0x91e   :  { %v1035_v32 = vld [vmem:[#allocation3 + $0x10] sm:$0xff] }
 0x91f   :  { %2958 = vtanh.f32 %v576_v31  ;;  %v2353_v34 = vmul.f32 -1.442695, %v576_v31  ;;  %v1034_v31 = vld [vmem:[#allocation3 + $0x8] sm:$0xff] }
 0x921   :  { %2960 = vpow2.f32 %v2353_v34 }
 0x929   :  { %v2959_v33 = vpop.eup %2958 }
 0x92a   :  { %586 = vrot.lane.b32.xlu1 %v2959_v33, %s3065_s25 }
 0x92b   :  { %v2961_v35 = vpop.eup %2960 }
 0x92c   :  { %v580_v36 = vadd.f32 1.0, %v2961_v35 }
 0x92e   :  { %2962 = vrcp.f32 %v580_v36  ;;  %v166_v36 = vadd.f32 %v3169_v17, %v3225_v6 }
 0x938   :  { %v2963_v37 = vpop.eup %2962 }
 0x939   :  { %v584_v40 = vmul.f32 %v2963_v37, %v489_v24 }
 0x99c   :  { %v587_v38 = vpop.permute.xlu1 %586 }
 0x99d   :  { %v589_v39 = vmul.f32 %v2963_v37, %v587_v38 }
 0x99f   :  { %591 = vrot.lane.b32.xlu0 %v589_v39, %s3066_s28 }
 0xa11   :  { %v592_v41 = vpop.permute.xlu0 %591 }
 0xa12   :  { %v594_v42 = vadd.f32 %v592_v41, %v584_v40 }
 0xa14   :  { %2964 = vtanh.f32 %v594_v42 }
 0xa1e   :  { %v2965_v43 = vpop.eup %2964 }
 0xa1f   :  { %597 = vrot.lane.b32.xlu1 %v2965_v43, %s3065_s25 }
 0xa91   :  { %v598_v44 = vpop.permute.xlu1 %597 }
 0xa92   :  { %v600_v45 = vmul.f32 %v2963_v37, %v598_v44 }
 0xa94   :  { %602 = vrot.lane.b32.xlu0 %v600_v45, %s3066_s28 }
 0xb06   :  { %v603_v46 = vpop.permute.xlu0 %602 }
 0xb07   :  { %606 = vst.msk [vmem:[#allocation3 + $0x18] sm:$0xff] %vm44_vm0, %v603_v46  ;;  %2617 = vmatmul.mubr.msk.f32.vlgmr.msra.gmra.mrb[10].mxu0 %vm44_vm0, %v603_v46 }
 0xb08   :  { %2846 = vmatpush3.bf16.msra.mxu0 %v3129_v9  ;;  %2638 = vmatprep.mubr.msk.f32.mxu0 %vm3063_vm1, %v3064_v4 }
 0xb09   :  { %2847 = vmatprep.subr.bf16.mxu0 %v3062_v2 }
 0xb0c   :  { %2849 = vmatpush3.bf16.msra.mxu0 %v3142_v14 }
 0xb0d   :  { %2857 = vmatprep.subr.bf16.mxu0 %v2856_v22 }
 0xb0e   :  { %v1036_v33 = vld [vmem:[#allocation3 + $0x18] sm:$0xff] }
 0xbda   :  { %v677_v48 = vpop.f32.mrb[10].mxu0 }
 0xbdb   :  { %v681_v49 = vadd.f32 %v677_v48, %v156_v47  ;;  %v2618_v50 = vpop.f32.mrb[11].mxu0 }
 0xbdd   :  { %2966 = vtanh.f32 %v681_v49  ;;  %v2355_v52 = vmul.f32 -1.442695, %v681_v49 }
 0xbdf   :  { %2968 = vpow2.f32 %v2355_v52 }
 0xbe7   :  { %v2967_v51 = vpop.eup %2966 }
 0xbe8   :  { %691 = vrot.lane.b32.xlu1 %v2967_v51, %s3065_s25 }
 0xbe9   :  { %v2969_v53 = vpop.eup %2968 }
 0xbea   :  { %v685_v54 = vadd.f32 1.0, %v2969_v53 }
 0xbec   :  { %2970 = vrcp.f32 %v685_v54 }
 0xbf6   :  { %v2971_v55 = vpop.eup %2970 }
 0xbf7   :  { %v689_v58 = vmul.f32 %v2971_v55, %v594_v42 }
 0xc5a   :  { %v692_v56 = vpop.permute.xlu1 %691 }
 0xc5b   :  { %v694_v57 = vmul.f32 %v2971_v55, %v692_v56  ;;  %v2366_v56 = vld [vmem:[%s3587_s3 + $0x68] sm:$0xff] }
 0xc5d   :  { %696 = vrot.lane.b32.xlu0 %v694_v57, %s3066_s28  ;;  %v2367_v57 = vld [vmem:[%s3587_s3 + $0x70] sm:$0xff] }
 0xccf   :  { %v697_v59 = vpop.permute.xlu0 %696 }
 0xcd0   :  { %v699_v60 = vadd.f32 %v697_v59, %v689_v58  ;;  %v3325_v58 = vpack.c.bf16 %v2367_v57, %v2366_v56  ;;  %v2368_v59 = vld [vmem:[%s3587_s3 + $0x78] sm:$0xff] }
 0xcd2   :  { %2972 = vtanh.f32 %v699_v60 }
 0xcdc   :  { %v2973_v61 = vpop.eup %2972 }
 0xcdd   :  { %702 = vrot.lane.b32.xlu1 %v2973_v61, %s3065_s25 }
 0xd4f   :  { %v703_v62 = vpop.permute.xlu1 %702 }
 0xd50   :  { %v705_v63 = vmul.f32 %v2971_v55, %v703_v62 }
 0xd52   :  { %707 = vrot.lane.b32.xlu0 %v705_v63, %s3066_s28 }
 0xdc4   :  { %v708_v0 = vpop.permute.xlu0 %707 }
 0xdc5   :  { %711 = vst.msk [vmem:[#allocation3 + $0x20] sm:$0xff] %vm44_vm0, %v708_v0  ;;  %2628 = vmatmul.mubr.msk.f32.vlgmr.msra.gmra.mrb[6].mxu1 %vm44_vm0, %v708_v0  ;;  %v2381_v0 = vld [vmem:[%s3590_s2 + $0x8] sm:$0xff] }
 0xdc6   :  { %2852 = vmatpush3.bf16.msra.mxu1 %v3129_v9  ;;  %2649 = vmatprep.mubr.msk.f32.mxu1 %vm3063_vm1, %v3064_v4 }
 0xdc7   :  { %2853 = vmatprep.subr.bf16.mxu1 %v3062_v2 }
 0xdca   :  { %2855 = vmatpush3.bf16.msra.mxu1 %v3142_v14 }
 0xdcb   :  { %2864 = vmatprep.subr.bf16.mxu1 %v3062_v2 }
 0xdcc   :  { %v1037_v34 = vld [vmem:[#allocation3 + $0x20] sm:$0xff] }
 0xe98   :  { %v782_v7 = vpop.f32.mrb[6].mxu1 }
 0xe99   :  { %v786_v8 = vadd.f32 %v782_v7, %v161_v3  ;;  %v2629_v10 = vpop.f32.mrb[7].mxu1  ;;  %v2380_v7 = vld [vmem:[%s3589_s1 + $0x8] sm:$0xff] }
 0xe9a   :  { %v171_v10 = vadd.f32 %v3223_v5, %v3169_v17 }
 0xe9b   :  { %2974 = vtanh.f32 %v786_v8  ;;  %v2357_v9 = vmul.f32 -1.442695, %v786_v8 }
 0xe9d   :  { %2976 = vpow2.f32 %v2357_v9 }
 0xea5   :  { %v2975_v11 = vpop.eup %2974 }
 0xea6   :  { %796 = vrot.lane.b32.xlu1 %v2975_v11, %s3065_s25 }
 0xea7   :  { %v2977_v12 = vpop.eup %2976 }
 0xea8   :  { %v790_v13 = vadd.f32 1.0, %v2977_v12 }
 0xeaa   :  { %2978 = vrcp.f32 %v790_v13  ;;  %v3368_v13 = vld [vmem:[%s3587_s3 + $0x88] ss:$0 sm:$0xff] }
 0xeb4   :  { %v2979_v15 = vpop.eup %2978 }
 0xeb5   :  { %v794_v18 = vmul.f32 %v2979_v15, %v699_v60  ;;  %v2369_v60 = vld [vmem:[%s3587_s3 + $0x80] sm:$0xff] }
 0xeb6   :  { %v3335_v61 = vpack.c.bf16 %v2369_v60, %v2368_v59 }
 0xf18   :  { %v797_v16 = vpop.permute.xlu1 %796 }
 0xf19   :  { %v799_v14 = vmul.f32 %v2979_v15, %v797_v16 }
 0xf1b   :  { %801 = vrot.lane.b32.xlu0 %v799_v14, %s3066_s28 }
 0xf8d   :  { %v802_v19 = vpop.permute.xlu0 %801 }
 0xf8e   :  { %v804_v1 = vadd.f32 %v802_v19, %v794_v18 }
 0xf90   :  { %2980 = vtanh.f32 %v804_v1 }
 0xf9a   :  { %v2981_v23 = vpop.eup %2980 }
 0xf9b   :  { %807 = vrot.lane.b32.xlu1 %v2981_v23, %s3065_s25 }
0x100d   :  { %v808_v24 = vpop.permute.xlu1 %807 }
0x100e   :  { %v810_v25 = vmul.f32 %v2979_v15, %v808_v24 }
0x1010   :  { %812 = vrot.lane.b32.xlu0 %v810_v25, %s3066_s28 }
0x1082   :  { %v813_v29 = vpop.permute.xlu0 %812 }
0x1083   :  { %816 = vst.msk [vmem:[#allocation3 + $0x28] sm:$0xff] %vm44_vm0, %v813_v29  ;;  %2639 = vmatmul.mubr.msk.f32.vlgmr.msra.gmra.mrb[12].mxu0 %vm44_vm0, %v813_v29 }
0x1084   :  { %2859 = vmatpush3.bf16.msra.mxu0 %v2856_v22  ;;  %2660 = vmatprep.mubr.msk.f32.mxu0 %vm44_vm0, %v1033_v30 }
0x1085   :  { %2861 = vmatprep.subr.bf16.mxu0 %v2860_v28 }
0x1088   :  { %2863 = vmatpush3.bf16.msra.mxu0 %v2860_v28 }
0x1089   :  { %2876 = vmatprep.subr.bf16.mxu0 %v3062_v2 }
0x108a   :  { %v1038_v35 = vld [vmem:[#allocation3 + $0x28] sm:$0xff] }
0x108b   :  { %2661 = vmatmul.mubr.msk.f32.vlgmr.msra.gmra.mrb[14].mxu0 %vm44_vm0, %v1034_v31 }
0x108c   :  { %2663 = vmatprep.mubr.msk.f32.mxu0 %vm44_vm0, %v1035_v32  ;;  %2878 = vmatpush3.bf16.msra.mxu0 %v3325_v58 }
0x108d   :  { %2879 = vmatprep.subr.bf16.mxu0 %v3062_v2 }
0x108f   :  { %2664 = vmatmul.mubr.msk.f32.gmra.mrb[16].mxu0 %vm44_vm0, %v1036_v33 }
0x1090   :  { %2666 = vmatprep.mubr.msk.f32.mxu0 %vm44_vm0, %v1037_v34  ;;  %2881 = vmatpush3.bf16.msra.mxu0 %v3335_v61 }
0x1091   :  { %2888 = vmatprep.subr.bf16.mxu0 %v3062_v2 }
0x1093   :  { %2667 = vmatmul.mubr.msk.f32.gmra.mrb[18].mxu0 %vm44_vm0, %v1038_v35 }
0x1156   :  { %v887_v37 = vpop.f32.mrb[12].mxu0 }
0x1157   :  { %v891_v38 = vadd.f32 %v887_v37, %v166_v36  ;;  %v2640_v39 = vpop.f32.mrb[13].mxu0 }
0x1159   :  { %2982 = vtanh.f32 %v891_v38  ;;  %v2359_v47 = vmul.f32 -1.442695, %v891_v38 }
0x115b   :  { %2984 = vpow2.f32 %v2359_v47 }
0x115e   :  { %v3303_v40 = vpop.f32.mrb[14].mxu0 }
0x115f   :  { %v1145_v41 = vpop.f32.mrb[15].mxu0 }
0x1160   :  { %v1146_v15 = vadd.f32 %v3368_v13, %v1145_v41 }
0x1162   :  { %v3305_v42 = vpop.f32.mrb[16].mxu0 }
0x1163   :  { %v2983_v43 = vpop.eup %2982  ;;  %v3307_v44 = vpop.f32.mrb[17].mxu0 }
0x1164   :  { %901 = vrot.lane.b32.xlu1 %v2983_v43, %s3065_s25 }
0x1165   :  { %v2985_v6 = vpop.eup %2984 }
0x1166   :  { %v3310_v45 = vpop.f32.mrb[18].mxu0  ;;  %v895_v48 = vadd.f32 1.0, %v2985_v6 }
0x1167   :  { %v3312_v46 = vpop.f32.mrb[19].mxu0 }
0x1168   :  { %2986 = vrcp.f32 %v895_v48  ;;  %v1151_v48 = vadd.f32 %v3303_v40, %v3368_v13 }
0x1172   :  { %v2987_v49 = vpop.eup %2986 }
0x1173   :  { %v899_v52 = vmul.f32 %v2987_v49, %v804_v1 }
0x11d6   :  { %v902_v50 = vpop.permute.xlu1 %901 }
0x11d7   :  { %v904_v51 = vmul.f32 %v2987_v49, %v902_v50 }
0x11d9   :  { %906 = vrot.lane.b32.xlu0 %v904_v51, %s3066_s28 }
0x124b   :  { %v907_v53 = vpop.permute.xlu0 %906 }
0x124c   :  { %v3315_v54 = vadd.f32 %v907_v53, %v899_v52 }
0x124e   :  { %2988 = vtanh.f32 %v3315_v54 }
0x1258   :  { %v2989_v55 = vpop.eup %2988 }
0x1259   :  { %912 = vrot.lane.b32.xlu1 %v2989_v55, %s3065_s25 }
0x12cb   :  { %v913_v62 = vpop.permute.xlu1 %912 }
0x12cc   :  { %v915_v63 = vmul.f32 %v2987_v49, %v913_v62 }
0x12ce   :  { %917 = vrot.lane.b32.xlu0 %v915_v63, %s3066_s28 }
0x12d2   :  { %1279 = vrot.lane.b32.xlu0 %v2381_v0, %s3066_s28 }
0x1340   :  { %v918_v3 = vpop.permute.xlu0 %917 }
0x1341   :  { %921 = vst.msk [vmem:[#allocation3 + $0x30] sm:$0xff] %vm44_vm0, %v918_v3  ;;  %2650 = vmatmul.mubr.msk.f32.vlgmr.msra.gmra.mrb[8].mxu1 %vm44_vm0, %v918_v3 }
0x1342   :  { %2866 = vmatpush3.bf16.msra.mxu1 %v3325_v58  ;;  %2680 = vmatprep.mubr.msk.f32.mxu1 %vm3063_vm1, %v3064_v4 }
0x1343   :  { %2867 = vmatprep.subr.bf16.mxu1 %v3062_v2 }
0x1344   :  { %v1280_v23 = vpop.permute.xlu0 %1279 }
0x1346   :  { %2869 = vmatpush3.bf16.msra.mxu1 %v3335_v61 }
0x1347   :  { %2870 = vmatprep.subr.bf16.mxu1 %v3062_v2 }
0x1348   :  { %v1039_v8 = vld [vmem:[#allocation3 + $0x30] sm:$0xff] }
0x1349   :  { %2681 = vmatmul.mubr.msk.f32.vlgmr.msra.gmra.mrb[10].mxu1 %vm44_vm0, %v2380_v7  ;;  %2669 = vmatprep.mubr.msk.f32.mxu0 %vm44_vm0, %v1039_v8 }
0x134a   :  { %2872 = vmatpush3.bf16.msra.mxu1 %v3325_v58  ;;  %2691 = vmatprep.mubr.msk.f32.mxu1 %vm3063_vm1, %v3064_v4 }
0x134b   :  { %2873 = vmatprep.subr.bf16.mxu1 %v3062_v2 }
0x134e   :  { %2875 = vmatpush3.bf16.msra.mxu1 %v3335_v61 }
0x134f   :  { %2882 = vmatprep.subr.bf16.mxu1 %v3062_v2 }
0x1414   :  { %v992_v11 = vpop.f32.mrb[8].mxu1 }
0x1415   :  { %v996_v9 = vadd.f32 %v992_v11, %v171_v10  ;;  %v2651_v12 = vpop.f32.mrb[9].mxu1 }
0x1416   :  { %v1156_v12 = vadd.f32 %v3368_v13, %v3307_v44 }
0x1417   :  { %v2361_v29 = vmul.f32 -1.442695, %v996_v9 }
0x141c   :  { %v1266_v16 = vpop.f32.mrb[10].mxu1 }
0x141d   :  { %v1270_v14 = vadd.f32 %v1266_v16, %v1146_v15  ;;  %v2682_v18 = vpop.f32.mrb[11].mxu1 }
0x141f   :  { %2990 = vtanh.f32 %v1270_v14  ;;  %v2383_v1 = vmul.f32 -1.442695, %v1270_v14 }
0x1421   :  { %2992 = vpow2.f32 %v2383_v1 }
0x1429   :  { %v2991_v19 = vpop.eup %2990 }
0x142a   :  { %1284 = vrot.lane.b32.xlu1 %v2991_v19, %s3065_s25 }
0x142b   :  { %v2993_v17 = vpop.eup %2992 }
0x142c   :  { %v1274_v5 = vadd.f32 1.0, %v2993_v17 }
0x142e   :  { %2994 = vrcp.f32 %v1274_v5 }
0x1438   :  { %v2995_v20 = vpop.eup %2994 }
0x1439   :  { %v1282_v24 = vmul.f32 %v2995_v20, %v1280_v23 }
0x149c   :  { %v1285_v21 = vpop.permute.xlu1 %1284 }
0x149d   :  { %v1287_v22 = vmul.f32 %v2995_v20, %v1285_v21 }
0x149f   :  { %1289 = vrot.lane.b32.xlu1 %v1287_v22, %s3066_s28 }
0x1511   :  { %v1290_v25 = vpop.permute.xlu1 %1289 }
0x1512   :  { %v1292_v26 = vadd.f32 %v1290_v25, %v1282_v24 }
0x1514   :  { %2996 = vtanh.f32 %v1292_v26 }
0x1515   :  { %2998 = vtanh.f32 %v996_v9 }
0x1516   :  { %3000 = vpow2.f32 %v2361_v29 }
0x151e   :  { %v2997_v27 = vpop.eup %2996 }
0x151f   :  { %1295 = vrot.lane.b32.xlu0 %v2997_v27, %s3065_s25  ;;  %v2999_v28 = vpop.eup %2998 }
0x1520   :  { %v3001_v30 = vpop.eup %3000 }
0x1521   :  { %v1000_v31 = vadd.f32 1.0, %v3001_v30 }
0x1523   :  { %1006 = vrot.lane.b32.xlu0 %v2999_v28, %s3065_s25  ;;  %3002 = vrcp.f32 %v1000_v31  ;;  %v1161_v28 = vadd.f32 %v3305_v42, %v3368_v13 }
0x152d   :  { %v3003_v34 = vpop.eup %3002 }
0x152e   :  { %v1004_v38 = vmul.f32 %v3003_v34, %v3315_v54 }
0x1591   :  { %v1296_v32 = vpop.permute.xlu0 %1295 }
0x1592   :  { %v1298_v33 = vmul.f32 %v2995_v20, %v1296_v32 }
0x1594   :  { %1300 = vrot.lane.b32.xlu1 %v1298_v33, %s3066_s28 }
0x1595   :  { %v1007_v35 = vpop.permute.xlu0 %1006 }
0x1596   :  { %v1009_v36 = vmul.f32 %v3003_v34, %v1007_v35 }
0x1598   :  { %1011 = vrot.lane.b32.xlu0 %v1009_v36, %s3066_s28 }
0x1606   :  { %v1301_v37 = vpop.permute.xlu1 %1300 }
0x1607   :  { %1303 = vst.msk [vmem:[#allocation3] sm:$0xff] %vm44_vm0, %v1301_v37  ;;  %2692 = vmatmul.mubr.msk.f32.vlgmr.msra.gmra.mrb[12].mxu1 %vm44_vm0, %v1301_v37 }
0x1608   :  { %2884 = vmatpush3.bf16.msra.mxu1 %v3325_v58  ;;  %2713 = vmatprep.mubr.msk.f32.mxu1 %vm3063_vm1, %v3064_v4 }
0x1609   :  { %2885 = vmatprep.subr.bf16.mxu1 %v3062_v2 }
0x160a   :  { %v1012_v39 = vpop.permute.xlu0 %1011 }
0x160b   :  { %v3384_v41 = vadd.f32 %v1012_v39, %v1004_v38 }
0x160c   :  { %2887 = vmatpush3.bf16.msra.mxu1 %v3335_v61 }
0x160d   :  { %3004 = vtanh.f32 %v3384_v41  ;;  %2894 = vmatprep.subr.bf16.mxu1 %v3062_v2 }
0x1617   :  { %v3005_v43 = vpop.eup %3004 }
0x1618   :  { %1017 = vrot.lane.b32.xlu0 %v3005_v43, %s3065_s25 }
0x168a   :  { %v1018_v47 = vpop.permute.xlu0 %1017 }
0x168b   :  { %v1020_v6 = vmul.f32 %v3003_v34, %v1018_v47 }
0x168d   :  { %1022 = vrot.lane.b32.xlu0 %v1020_v6, %s3066_s28 }
0x16da   :  { %v1373_v49 = vpop.f32.mrb[12].mxu1 }
0x16db   :  { %v1377_v50 = vadd.f32 %v1373_v49, %v1151_v48  ;;  %v2693_v51 = vpop.f32.mrb[13].mxu1 }
0x16dd   :  { %3006 = vtanh.f32 %v1377_v50  ;;  %v2385_v40 = vmul.f32 -1.442695, %v1377_v50  ;;  %v1166_v50 = vadd.f32 %v3368_v13, %v3312_v46 }
0x16df   :  { %3008 = vpow2.f32 %v2385_v40 }
0x16e7   :  { %v3007_v52 = vpop.eup %3006 }
0x16e8   :  { %1387 = vrot.lane.b32.xlu1 %v3007_v52, %s3065_s25 }
0x16e9   :  { %v3009_v55 = vpop.eup %3008 }
0x16ea   :  { %v1381_v56 = vadd.f32 1.0, %v3009_v55 }
0x16ec   :  { %3010 = vrcp.f32 %v1381_v56 }
0x16f6   :  { %v3011_v57 = vpop.eup %3010 }
0x16f7   :  { %v1385_v62 = vmul.f32 %v3011_v57, %v1292_v26 }
0x16ff   :  { %v1023_v53 = vpop.permute.xlu0 %1022 }
0x1700   :  { %1026 = vst.msk [vmem:[#allocation3 + $0x38] sm:$0xff] %vm44_vm0, %v1023_v53  ;;  %1027 = vst.msk [vmem:[%s3591_s6] sm:$0xff] %vm44_vm0, %v1023_v53 }
0x1707   :  { %v1040_v54 = vld [vmem:[#allocation3 + $0x38] sm:$0xff] }
0x1708   :  { %2670 = vmatmul.mubr.msk.f32.gmra.mrb[20].mxu0 %vm44_vm0, %v1040_v54 }
0x1709   :  { %2702 = vmatprep.mubr.msk.f32.mxu0 %vm3063_vm1, %v3064_v4 }
0x175a   :  { %v1388_v59 = vpop.permute.xlu1 %1387 }
0x175b   :  { %v1390_v60 = vmul.f32 %v3011_v57, %v1388_v59 }
0x175d   :  { %1392 = vrot.lane.b32.xlu1 %v1390_v60, %s3066_s28 }
0x17cf   :  { %v1393_v63 = vpop.permute.xlu1 %1392 }
0x17d0   :  { %v1395_v0 = vadd.f32 %v1393_v63, %v1385_v62 }
0x17d2   :  { %3012 = vtanh.f32 %v1395_v0 }
0x17db   :  { %v3403_v3 = vpop.f32.mrb[20].mxu0 }
0x17dc   :  { %v3013_v7 = vpop.eup %3012  ;;  %v3405_v8 = vpop.f32.mrb[21].mxu0 }
0x17dd   :  { %1398 = vrot.lane.b32.xlu1 %v3013_v7, %s3065_s25 }
0x184f   :  { %v1399_v10 = vpop.permute.xlu1 %1398 }
0x1850   :  { %v1401_v11 = vmul.f32 %v3011_v57, %v1399_v10 }
0x1852   :  { %1403 = vrot.lane.b32.xlu1 %v1401_v11, %s3066_s28 }
0x18c4   :  { %v1404_v9 = vpop.permute.xlu1 %1403 }
0x18c5   :  { %1406 = vst.msk [vmem:[#allocation3 + $0x8] sm:$0xff] %vm44_vm0, %v1404_v9  ;;  %2703 = vmatmul.mubr.msk.f32.vlgmr.msra.gmra.mrb[22].mxu0 %vm44_vm0, %v1404_v9  ;;  %v1171_v9 = vadd.f32 %v3310_v45, %v3368_v13 }
0x18c6   :  { %2890 = vmatpush3.bf16.msra.mxu0 %v3325_v58  ;;  %2724 = vmatprep.mubr.msk.f32.mxu0 %vm3063_vm1, %v3064_v4 }
0x18c7   :  { %2891 = vmatprep.subr.bf16.mxu0 %v3062_v2 }
0x18ca   :  { %2893 = vmatpush3.bf16.msra.mxu0 %v3335_v61 }
0x18cb   :  { %2900 = vmatprep.subr.bf16.mxu0 %v3062_v2 }
0x1998   :  { %v1476_v15 = vpop.f32.mrb[22].mxu0 }
0x1999   :  { %v1480_v16 = vadd.f32 %v1476_v15, %v1156_v12  ;;  %v2704_v14 = vpop.f32.mrb[23].mxu0 }
0x199b   :  { %3014 = vtanh.f32 %v1480_v16  ;;  %v2387_v19 = vmul.f32 -1.442695, %v1480_v16 }
0x199d   :  { %3016 = vpow2.f32 %v2387_v19 }
0x19a5   :  { %v3015_v18 = vpop.eup %3014 }
0x19a6   :  { %1490 = vrot.lane.b32.xlu0 %v3015_v18, %s3065_s25 }
0x19a7   :  { %v3017_v1 = vpop.eup %3016 }
0x19a8   :  { %v1484_v17 = vadd.f32 1.0, %v3017_v1 }
0x19aa   :  { %3018 = vrcp.f32 %v1484_v17 }
0x19b4   :  { %v3019_v5 = vpop.eup %3018 }
0x19b5   :  { %v1488_v22 = vmul.f32 %v3019_v5, %v1395_v0 }
0x1a18   :  { %v1491_v20 = vpop.permute.xlu0 %1490 }
0x1a19   :  { %v1493_v21 = vmul.f32 %v3019_v5, %v1491_v20  ;;  %v2042_v20 = vld [vmem:[%s3592_s4 + $0x10] sm:$0xff] }
0x1a1b   :  { %1495 = vrot.lane.b32.xlu1 %v1493_v21, %s3066_s28 }
0x1a8d   :  { %v1496_v23 = vpop.permute.xlu1 %1495 }
0x1a8e   :  { %v1498_v44 = vadd.f32 %v1496_v23, %v1488_v22 }
0x1a90   :  { %3020 = vtanh.f32 %v1498_v44 }
0x1a9a   :  { %v3021_v24 = vpop.eup %3020 }
0x1a9b   :  { %1501 = vrot.lane.b32.xlu0 %v3021_v24, %s3065_s25  ;;  %v2043_v24 = vld [vmem:[%s3592_s4 + $0x20] sm:$0xff] }
0x1b0d   :  { %v1502_v25 = vpop.permute.xlu0 %1501 }
0x1b0e   :  { %v1504_v26 = vmul.f32 %v3019_v5, %v1502_v25  ;;  %v2041_v5 = vld [vmem:[%s3592_s4] sm:$0xff]  ;;  %v2044_v25 = vld [vmem:[%s3592_s4 + $0x30] sm:$0xff] }
0x1b0f   :  { %v2912_v21 = vpack.c.bf16 %v2042_v20, %v2041_v5 }
0x1b10   :  { %1506 = vrot.lane.b32.xlu1 %v1504_v26, %s3066_s28  ;;  %v2916_v26 = vpack.c.bf16 %v2044_v25, %v2043_v24 }
0x1b82   :  { %v1507_v27 = vpop.permute.xlu1 %1506 }
0x1b83   :  { %1509 = vst.msk [vmem:[#allocation3 + $0x10] sm:$0xff] %vm44_vm0, %v1507_v27  ;;  %2714 = vmatmul.mubr.msk.f32.vlgmr.msra.gmra.mrb[14].mxu1 %vm44_vm0, %v1507_v27 }
0x1b84   :  { %2896 = vmatpush3.bf16.msra.mxu1 %v3325_v58  ;;  %2735 = vmatprep.mubr.msk.f32.mxu1 %vm3063_vm1, %v3064_v4 }
0x1b85   :  { %2897 = vmatprep.subr.bf16.mxu1 %v3062_v2 }
0x1b88   :  { %2899 = vmatpush3.bf16.msra.mxu1 %v3335_v61 }
0x1b89   :  { %2906 = vmatprep.subr.bf16.mxu1 %v3062_v2 }
0x1c56   :  { %v1579_v29 = vpop.f32.mrb[14].mxu1 }
0x1c57   :  { %v1583_v30 = vadd.f32 %v1579_v29, %v1161_v28  ;;  %v2715_v31 = vpop.f32.mrb[15].mxu1  ;;  %v2033_v28 = vld [vmem:[#allocation3] sm:$0xff]  ;;  %v2034_v29 = vld [vmem:[#allocation3 + $0x8] sm:$0xff] }
0x1c59   :  { %3022 = vtanh.f32 %v1583_v30  ;;  %v2389_v33 = vmul.f32 -1.442695, %v1583_v30  ;;  %v2035_v30 = vld [vmem:[#allocation3 + $0x10] sm:$0xff] }
0x1c5b   :  { %3024 = vpow2.f32 %v2389_v33 }
0x1c63   :  { %v3023_v32 = vpop.eup %3022 }
0x1c64   :  { %1593 = vrot.lane.b32.xlu0 %v3023_v32, %s3065_s25 }
0x1c65   :  { %v3025_v34 = vpop.eup %3024 }
0x1c66   :  { %v1587_v35 = vadd.f32 1.0, %v3025_v34  ;;  %v1176_v34 = vadd.f32 %v3368_v13, %v3405_v8 }
0x1c68   :  { %3026 = vrcp.f32 %v1587_v35 }
0x1c72   :  { %v3027_v36 = vpop.eup %3026 }
0x1c73   :  { %v1591_v39 = vmul.f32 %v3027_v36, %v1498_v44 }
0x1cd6   :  { %v1594_v37 = vpop.permute.xlu0 %1593 }
0x1cd7   :  { %v1596_v38 = vmul.f32 %v3027_v36, %v1594_v37 }
0x1cd9   :  { %1598 = vrot.lane.b32.xlu1 %v1596_v38, %s3066_s28 }
0x1d4b   :  { %v1599_v43 = vpop.permute.xlu1 %1598 }
0x1d4c   :  { %v1601_v42 = vadd.f32 %v1599_v43, %v1591_v39 }
0x1d4e   :  { %3028 = vtanh.f32 %v1601_v42 }
0x1d58   :  { %v3029_v47 = vpop.eup %3028 }
0x1d59   :  { %1604 = vrot.lane.b32.xlu0 %v3029_v47, %s3065_s25 }
0x1dcb   :  { %v1605_v6 = vpop.permute.xlu0 %1604 }
0x1dcc   :  { %v1607_v48 = vmul.f32 %v3027_v36, %v1605_v6 }
0x1dce   :  { %1609 = vrot.lane.b32.xlu1 %v1607_v48, %s3066_s28 }
0x1e40   :  { %v1610_v49 = vpop.permute.xlu1 %1609 }
0x1e41   :  { %1612 = vst.msk [vmem:[#allocation3 + $0x18] sm:$0xff] %vm44_vm0, %v1610_v49  ;;  %2725 = vmatmul.mubr.msk.f32.vlgmr.msra.gmra.mrb[24].mxu0 %vm44_vm0, %v1610_v49 }
0x1e42   :  { %2902 = vmatpush3.bf16.msra.mxu0 %v3325_v58  ;;  %2746 = vmatprep.mubr.msk.f32.mxu0 %vm3063_vm1, %v3064_v4 }
0x1e43   :  { %2903 = vmatprep.subr.bf16.mxu0 %v3062_v2 }
0x1e46   :  { %2905 = vmatpush3.bf16.msra.mxu0 %v3335_v61 }
0x1e47   :  { %2913 = vmatprep.subr.bf16.mxu0 %v2912_v21 }
0x1e48   :  { %v2036_v31 = vld [vmem:[#allocation3 + $0x18] sm:$0xff] }
0x1f14   :  { %v1682_v51 = vpop.f32.mrb[24].mxu0 }
0x1f15   :  { %v1686_v52 = vadd.f32 %v1682_v51, %v1166_v50  ;;  %v2726_v53 = vpop.f32.mrb[25].mxu0 }
0x1f17   :  { %3030 = vtanh.f32 %v1686_v52  ;;  %v2391_v40 = vmul.f32 -1.442695, %v1686_v52 }
0x1f19   :  { %3032 = vpow2.f32 %v2391_v40 }
0x1f21   :  { %v3031_v54 = vpop.eup %3030 }
0x1f22   :  { %1696 = vrot.lane.b32.xlu0 %v3031_v54, %s3065_s25 }
0x1f23   :  { %v3033_v55 = vpop.eup %3032 }
0x1f24   :  { %v1690_v56 = vadd.f32 1.0, %v3033_v55 }
0x1f26   :  { %3034 = vrcp.f32 %v1690_v56  ;;  %v2046_v56 = vld [vmem:[%s3592_s4 + $0x8] sm:$0xff] }
0x1f30   :  { %v3035_v57 = vpop.eup %3034 }
0x1f31   :  { %v1694_v62 = vmul.f32 %v3035_v57, %v1601_v42 }
0x1f94   :  { %v1697_v59 = vpop.permute.xlu0 %1696 }
0x1f95   :  { %v1699_v60 = vmul.f32 %v3035_v57, %v1697_v59 }
0x1f97   :  { %1701 = vrot.lane.b32.xlu1 %v1699_v60, %s3066_s28 }
0x2009   :  { %v1702_v63 = vpop.permute.xlu1 %1701 }
0x200a   :  { %v1704_v46 = vadd.f32 %v1702_v63, %v1694_v62 }
0x200c   :  { %3036 = vtanh.f32 %v1704_v46 }
0x2016   :  { %v3037_v0 = vpop.eup %3036 }
0x2017   :  { %1707 = vrot.lane.b32.xlu0 %v3037_v0, %s3065_s25 }
0x2089   :  { %v1708_v7 = vpop.permute.xlu0 %1707 }
0x208a   :  { %v1710_v10 = vmul.f32 %v3035_v57, %v1708_v7  ;;  %v2047_v57 = vld [vmem:[%s3592_s4 + $0x18] sm:$0xff]  ;;  %v2048_v7 = vld [vmem:[%s3592_s4 + $0x28] sm:$0xff] }
0x208b   :  { %v2920_v59 = vpack.c.bf16 %v2047_v57, %v2046_v56 }
0x208c   :  { %1712 = vrot.lane.b32.xlu1 %v1710_v10, %s3066_s28  ;;  %v2049_v10 = vld [vmem:[%s3592_s4 + $0x38] sm:$0xff] }
0x20fe   :  { %v1713_v11 = vpop.permute.xlu1 %1712 }
0x20ff   :  { %1715 = vst.msk [vmem:[#allocation3 + $0x20] sm:$0xff] %vm44_vm0, %v1713_v11  ;;  %2736 = vmatmul.mubr.msk.f32.vlgmr.msra.gmra.mrb[16].mxu1 %vm44_vm0, %v1713_v11  ;;  %v2924_v11 = vpack.c.bf16 %v2049_v10, %v2048_v7 }
0x2100   :  { %2908 = vmatpush3.bf16.msra.mxu1 %v3325_v58  ;;  %2757 = vmatprep.mubr.msk.f32.mxu1 %vm3063_vm1, %v3064_v4 }
0x2101   :  { %2909 = vmatprep.subr.bf16.mxu1 %v3062_v2 }
0x2104   :  { %2911 = vmatpush3.bf16.msra.mxu1 %v3335_v61 }
0x2105   :  { %2921 = vmatprep.subr.bf16.mxu1 %v2920_v59 }
0x2106   :  { %v2037_v32 = vld [vmem:[#allocation3 + $0x20] sm:$0xff] }
0x21d2   :  { %v1785_v12 = vpop.f32.mrb[16].mxu1 }
0x21d3   :  { %v1789_v15 = vadd.f32 %v1785_v12, %v1171_v9  ;;  %v2737_v16 = vpop.f32.mrb[17].mxu1 }
0x21d5   :  { %3038 = vtanh.f32 %v1789_v15  ;;  %v2393_v18 = vmul.f32 -1.442695, %v1789_v15 }
0x21d7   :  { %3040 = vpow2.f32 %v2393_v18 }
0x21df   :  { %v3039_v14 = vpop.eup %3038 }
0x21e0   :  { %1799 = vrot.lane.b32.xlu0 %v3039_v14, %s3065_s25 }
0x21e1   :  { %v3041_v58 = vpop.eup %3040 }
0x21e2   :  { %v1793_v19 = vadd.f32 1.0, %v3041_v58 }
0x21e4   :  { %3042 = vrcp.f32 %v1793_v19 }
0x21ee   :  { %v3043_v4 = vpop.eup %3042 }
0x21ef   :  { %v1797_v61 = vmul.f32 %v3043_v4, %v1704_v46  ;;  %v3501_v46 = vld [vmem:[%s3592_s4 + $0x40] ss:$0 sm:$0xff] }
0x2252   :  { %v1800_v1 = vpop.permute.xlu0 %1799 }
0x2253   :  { %v1802_v2 = vmul.f32 %v3043_v4, %v1800_v1 }
0x2255   :  { %1804 = vrot.lane.b32.xlu1 %v1802_v2, %s3066_s28 }
0x22c7   :  { %v1805_v17 = vpop.permute.xlu1 %1804 }
0x22c8   :  { %v1807_v45 = vadd.f32 %v1805_v17, %v1797_v61 }
0x22ca   :  { %3044 = vtanh.f32 %v1807_v45 }
0x22d4   :  { %v3045_v22 = vpop.eup %3044 }
0x22d5   :  { %1810 = vrot.lane.b32.xlu0 %v3045_v22, %s3065_s25  ;;  %v3529_v22 = vld [vmem:[%s3592_s4 + $0x48] ss:$0 sm:$0xff] }
0x2347   :  { %v1811_v23 = vpop.permute.xlu0 %1810 }
0x2348   :  { %v1813_v44 = vmul.f32 %v3043_v4, %v1811_v23 }
0x234a   :  { %1815 = vrot.lane.b32.xlu1 %v1813_v44, %s3066_s28 }
0x23bc   :  { %v1816_v27 = vpop.permute.xlu1 %1815 }
0x23bd   :  { %1818 = vst.msk [vmem:[#allocation3 + $0x28] sm:$0xff] %vm44_vm0, %v1816_v27  ;;  %2747 = vmatmul.mubr.msk.f32.vlgmr.msra.gmra.mrb[26].mxu0 %vm44_vm0, %v1816_v27 }
0x23be   :  { %2915 = vmatpush3.bf16.msra.mxu0 %v2912_v21  ;;  %2768 = vmatprep.mubr.msk.f32.mxu0 %vm44_vm0, %v2033_v28 }
0x23bf   :  { %2917 = vmatprep.subr.bf16.mxu0 %v2916_v26 }
0x23c2   :  { %2919 = vmatpush3.bf16.msra.mxu0 %v2916_v26 }
0x23c4   :  { %v2038_v33 = vld [vmem:[#allocation3 + $0x28] sm:$0xff] }
0x23c5   :  { %2769 = vmatmul.mubr.msk.f32.vlgmr.msra.gmra.mrb[28].mxu0 %vm44_vm0, %v2034_v29 }
0x23c6   :  { %2771 = vmatprep.mubr.msk.f32.mxu0 %vm44_vm0, %v2035_v30 }
0x23c9   :  { %2772 = vmatmul.mubr.msk.f32.gmra.mrb[30].mxu0 %vm44_vm0, %v2036_v31 }
0x23ca   :  { %2774 = vmatprep.mubr.msk.f32.mxu0 %vm44_vm0, %v2037_v32 }
0x23cd   :  { %2775 = vmatmul.mubr.msk.f32.gmra.mrb[32].mxu0 %vm44_vm0, %v2038_v33 }
0x2490   :  { %v1888_v35 = vpop.f32.mrb[26].mxu0 }
0x2491   :  { %v1892_v36 = vadd.f32 %v1888_v35, %v1176_v34  ;;  %v2748_v37 = vpop.f32.mrb[27].mxu0 }
0x2493   :  { %3046 = vtanh.f32 %v1892_v36  ;;  %v2395_v49 = vmul.f32 -1.442695, %v1892_v36 }
0x2495   :  { %3048 = vpow2.f32 %v2395_v49 }
0x2498   :  { %v2770_v38 = vpop.f32.mrb[28].mxu0 }
0x2499   :  { %v2141_v39 = vpop.f32.mrb[29].mxu0  ;;  %v2147_v15 = vadd.f32 %v2770_v38, %v3501_v46 }
0x249a   :  { %v2142_v0 = vadd.f32 %v2141_v39, %v3501_v46 }
0x249b   :  { %v2181_v14 = vmax.f32 %v2147_v15, 0.0 }
0x249c   :  { %v2773_v43 = vpop.f32.mrb[30].mxu0  ;;  %v2180_v9 = vmax.f32 %v2142_v0, 0.0 }
0x249d   :  { %v3047_v42 = vpop.eup %3046  ;;  %v2151_v47 = vpop.f32.mrb[31].mxu0  ;;  %v2157_v18 = vadd.f32 %v2773_v43, %v3501_v46 }
0x249e   :  { %1902 = vrot.lane.b32.xlu0 %v3047_v42, %s3065_s25  ;;  %v2152_v16 = vadd.f32 %v2151_v47, %v3501_v46 }
0x249f   :  { %v3049_v50 = vpop.eup %3048  ;;  %v2183_v1 = vmax.f32 %v2157_v18, 0.0 }
0x24a0   :  { %v2776_v6 = vpop.f32.mrb[32].mxu0  ;;  %v1896_v51 = vadd.f32 1.0, %v3049_v50  ;;  %v2182_v58 = vmax.f32 %v2152_v16, 0.0 }
0x24a1   :  { %v2161_v48 = vpop.f32.mrb[33].mxu0  ;;  %v2167_v2 = vadd.f32 %v2776_v6, %v3501_v46 }
0x24a2   :  { %3050 = vrcp.f32 %v1896_v51  ;;  %v2162_v19 = vadd.f32 %v2161_v48, %v3501_v46 }
0x24a3   :  { %v2185_v17 = vmax.f32 %v2167_v2, 0.0 }
0x24a4   :  { %v2184_v61 = vmax.f32 %v2162_v19, 0.0 }
0x24ac   :  { %v3051_v52 = vpop.eup %3050 }
0x24ad   :  { %v1900_v54 = vmul.f32 %v3051_v52, %v1807_v45  ;;  %v1181_v45 = vadd.f32 %v3403_v3, %v3368_v13 }
0x2510   :  { %v1903_v8 = vpop.permute.xlu0 %1902 }
0x2511   :  { %v1905_v53 = vmul.f32 %v3051_v52, %v1903_v8 }
0x2513   :  { %1907 = vrot.lane.b32.xlu1 %v1905_v53, %s3066_s28 }
0x2585   :  { %v1908_v40 = vpop.permute.xlu1 %1907 }
0x2586   :  { %v3487_v55 = vadd.f32 %v1908_v40, %v1900_v54 }
0x2588   :  { %3052 = vtanh.f32 %v3487_v55 }
0x2592   :  { %v3053_v60 = vpop.eup %3052 }
0x2593   :  { %1913 = vrot.lane.b32.xlu0 %v3053_v60, %s3065_s25 }
0x2605   :  { %v1914_v62 = vpop.permute.xlu0 %1913 }
0x2606   :  { %v1916_v63 = vmul.f32 %v3051_v52, %v1914_v62 }
0x2608   :  { %1918 = vrot.lane.b32.xlu1 %v1916_v63, %s3066_s28 }
0x267a   :  { %v1919_v12 = vpop.permute.xlu1 %1918 }
0x267b   :  { %1921 = vst.msk [vmem:[#allocation3 + $0x30] sm:$0xff] %vm44_vm0, %v1919_v12  ;;  %2758 = vmatmul.mubr.msk.f32.vlgmr.msra.gmra.mrb[18].mxu1 %vm44_vm0, %v1919_v12 }
0x267c   :  { %2923 = vmatpush3.bf16.msra.mxu1 %v2920_v59  ;;  %2788 = vmatprep.mubr.msk.f32.mxu1 %vm44_vm0, %v2180_v9 }
0x267d   :  { %2925 = vmatprep.subr.bf16.mxu1 %v2924_v11 }
0x2680   :  { %2927 = vmatpush3.bf16.msra.mxu1 %v2924_v11 }
0x2682   :  { %v2039_v4 = vld [vmem:[#allocation3 + $0x30] sm:$0xff] }
0x2683   :  { %2789 = vmatmul.mubr.msk.f32.vlgmr.msra.gmra.mrb[20].mxu1 %vm44_vm0, %v2181_v14  ;;  %2777 = vmatprep.mubr.msk.f32.mxu0 %vm44_vm0, %v2039_v4 }
0x2684   :  { %2791 = vmatprep.mubr.msk.f32.mxu1 %vm44_vm0, %v2182_v58 }
0x2687   :  { %2792 = vmatmul.mubr.msk.f32.gmra.mrb[22].mxu1 %vm44_vm0, %v2183_v1 }
0x2688   :  { %2794 = vmatprep.mubr.msk.f32.mxu1 %vm44_vm0, %v2184_v61 }
0x268b   :  { %2795 = vmatmul.mubr.msk.f32.gmra.mrb[24].mxu1 %vm44_vm0, %v2185_v17 }
0x274e   :  { %v1991_v5 = vpop.f32.mrb[18].mxu1 }
0x274f   :  { %v1995_v20 = vadd.f32 %v1991_v5, %v1181_v45  ;;  %v2759_v21 = vpop.f32.mrb[19].mxu1 }
0x2751   :  { %3054 = vtanh.f32 %v1995_v20  ;;  %v2397_v33 = vmul.f32 -1.442695, %v1995_v20 }
0x2753   :  { %3056 = vpow2.f32 %v2397_v33 }
0x2756   :  { %v2790_v23 = vpop.f32.mrb[20].mxu1 }
0x2757   :  { %v2284_v44 = vadd.f32 %v2790_v23, %v3529_v22  ;;  %v2278_v24 = vpop.f32.mrb[21].mxu1 }
0x2758   :  { %v2279_v25 = vadd.f32 %v2278_v24, %v3529_v22 }
0x2759   :  { %2318 = vst [vmem:[%s3593_s5 + $0x8] sm:$0xff] %v2284_v44 }
0x275a   :  { %2317 = vst [vmem:[%s3593_s5] sm:$0xff] %v2279_v25  ;;  %v2793_v13 = vpop.f32.mrb[22].mxu1 }
0x275b   :  { %v3055_v3 = vpop.eup %3054  ;;  %v2294_v26 = vadd.f32 %v2793_v13, %v3529_v22  ;;  %v2288_v27 = vpop.f32.mrb[23].mxu1 }
0x275c   :  { %v2289_v28 = vadd.f32 %v2288_v27, %v3529_v22  ;;  %2005 = vrot.lane.b32.xlu0 %v3055_v3, %s3065_s25 }
0x275d   :  { %2320 = vst [vmem:[%s3593_s5 + $0x18] sm:$0xff] %v2294_v26  ;;  %v3057_v34 = vpop.eup %3056 }
0x275e   :  { %2319 = vst [vmem:[%s3593_s5 + $0x10] sm:$0xff] %v2289_v28  ;;  %v2796_v29 = vpop.f32.mrb[24].mxu1  ;;  %v1999_v35 = vadd.f32 1.0, %v3057_v34 }
0x275f   :  { %v2304_v30 = vadd.f32 %v2796_v29, %v3529_v22  ;;  %v2298_v31 = vpop.f32.mrb[25].mxu1 }
0x2760   :  { %v2299_v32 = vadd.f32 %v2298_v31, %v3529_v22  ;;  %3058 = vrcp.f32 %v1999_v35 }
0x2761   :  { %2322 = vst [vmem:[%s3593_s5 + $0x28] sm:$0xff] %v2304_v30 }
0x2762   :  { %2321 = vst [vmem:[%s3593_s5 + $0x20] sm:$0xff] %v2299_v32 }
0x276a   :  { %v3059_v36 = vpop.eup %3058 }
0x276b   :  { %v2003_v39 = vmul.f32 %v3059_v36, %v3487_v55 }
0x27ce   :  { %v2006_v37 = vpop.permute.xlu0 %2005 }
0x27cf   :  { %v2008_v38 = vmul.f32 %v3059_v36, %v2006_v37 }
0x27d1   :  { %2010 = vrot.lane.b32.xlu1 %v2008_v38, %s3066_s28 }
0x2843   :  { %v2011_v43 = vpop.permute.xlu1 %2010 }
0x2844   :  { %v2013_v42 = vadd.f32 %v2011_v43, %v2003_v39 }
0x2846   :  { %3060 = vtanh.f32 %v2013_v42 }
0x2850   :  { %v3061_v47 = vpop.eup %3060 }
0x2851   :  { %2016 = vrot.lane.b32.xlu0 %v3061_v47, %s3065_s25 }
0x2855   :  { %1029 = vrot.lane.b32.xlu0 %v3384_v41, %s3067_s22 }
0x28c3   :  { %v2017_v6 = vpop.permute.xlu0 %2016 }
0x28c4   :  { %v2019_v48 = vmul.f32 %v3059_v36, %v2017_v6 }
0x28c6   :  { %2021 = vrot.lane.b32.xlu1 %v2019_v48, %s3066_s28 }
0x28c7   :  { %v1030_v49 = vpop.permute.xlu0 %1029 }
0x28c8   :  { %1032 = vst.msk [vmem:[%s3594_s7] sm:$0xff] %vm44_vm0, %v1030_v49 }
0x28ca   :  { %2028 = vrot.lane.b32.xlu1 %v2013_v42, %s3067_s22 }
0x2938   :  { %v2022_v50 = vpop.permute.xlu1 %2021 }
0x2939   :  { %2024 = vst.msk [vmem:[#allocation3 + $0x38] sm:$0xff] %vm44_vm0, %v2022_v50  ;;  %2398 = vst.msk [vmem:[%s3591_s6 + $0x8] sm:$0xff] %vm44_vm0, %v2022_v50 }
0x293c   :  { %v2029_v41 = vpop.permute.xlu1 %2028 }
0x293d   :  { %2399 = vst.msk [vmem:[%s3594_s7 + $0x8] sm:$0xff] %vm44_vm0, %v2029_v41 }
0x2940   :  { %v2040_v51 = vld [vmem:[#allocation3 + $0x38] sm:$0xff] }
0x2941   :  { %2778 = vmatmul.mubr.msk.f32.gmra.mrb[34].mxu0 %vm44_vm0, %v2040_v51 }
0x2a14   :  { %v2779_v52 = vpop.f32.mrb[34].mxu0 }
0x2a15   :  { %v2177_v8 = vadd.f32 %v2779_v52, %v3501_v46  ;;  %v2171_v53 = vpop.f32.mrb[35].mxu0 }
0x2a16   :  { %v2172_v54 = vadd.f32 %v2171_v53, %v3501_v46 }
0x2a17   :  { %v2187_v55 = vmax.f32 %v2177_v8, 0.0 }
0x2a18   :  { %v2186_v40 = vmax.f32 %v2172_v54, 0.0 }
0x2a1a   :  { %2797 = vmatprep.mubr.msk.f32.mxu1 %vm44_vm0, %v2186_v40 }
0x2a1b   :  { %2798 = vmatmul.mubr.msk.f32.gmra.mrb[26].mxu1 %vm44_vm0, %v2187_v55 }
0x2aee   :  { %v2799_v56 = vpop.f32.mrb[26].mxu1 }
0x2aef   :  { %v2314_v57 = vadd.f32 %v2799_v56, %v3529_v22  ;;  %v2308_v59 = vpop.f32.mrb[27].mxu1 }
0x2af0   :  { %v2309_v60 = vadd.f32 %v2308_v59, %v3529_v22 }
0x2af1   :  { %2324 = vst [vmem:[%s3593_s5 + $0x38] sm:$0xff] %v2314_v57 }
0x2af2   :  { %2323 = vst [vmem:[%s3593_s5 + $0x30] sm:$0xff] %v2309_v60 }

</bundles_post_ra>
